<compile_context>
chip_gen: v7x
topology: tpu7x:2x2x1
jax: 0.10.0
libtpu: 0.0.40
codegen_flags: <defaults>
</compile_context>

<pallas_src>
import jax
import jax.numpy as jnp
from jax.experimental import pallas as pl
from jax.experimental.pallas import tpu as pltpu

V = 50  # number of joints, fixed by fc_S(50->10->50) and the adjacency shape


# ----------------------------------------------------------------------------
# Main kernel: one batch tile, all 4 time segments, full attention pipeline
# ----------------------------------------------------------------------------
def spatial_attention_kernel(x_ref, a_cat_ref,
                             wT1_ref, bT1_ref, wT2_ref, bT2_ref,
                             wS1_ref, bS1_ref, wS2_ref, bS2_ref,
                             w41_ref, b41_ref, w42_ref, b42_ref,
                             out_ref):
    x = x_ref[...]                                   # (bn, c, 4, seg, v) f32
    bn, c, nseg, seg, v = x.shape
    inv_cv = 1.0 / (c * v)
    inv_cs = 1.0 / (c * seg)
    B = bn * nseg                                    # flattened (batch, segment)

    # ---- fc_T branch: AdaptiveAvg/MaxPool over (C, V), 1x1-conv MLP over seg ----
    # Reduce C (outer axis, cheap VPU adds) first, lane axis (V) last.
    x_csum = jnp.sum(x, axis=1)                      # (bn, 4, seg, v)
    avg_T = jnp.sum(x_csum, axis=-1) * inv_cv        # (bn, 4, seg)
    max_T = jnp.max(jnp.max(x, axis=1), axis=-1)     # (bn, 4, seg)

    pT = jnp.concatenate([avg_T.reshape(B, seg),
                          max_T.reshape(B, seg)], axis=0)            # (2B, seg)
    hT = jnp.maximum(jnp.dot(pT, wT1_ref[...],
                             preferred_element_type=jnp.float32) + bT1_ref[...], 0.0)
    yT = jnp.dot(hT, wT2_ref[...],
                 preferred_element_type=jnp.float32) + bT2_ref[...]  # (2B, seg)
    out_T = ((yT[:B] + yT[B:]) * 0.5).reshape(bn, nseg, seg)         # (bn, 4, seg)

    x_t = x * out_T[:, None, :, :, None]             # (bn, c, 4, seg, v)

    # ---- fc_S branch: AdaptiveAvg/MaxPool over (C, seg), 1x1-conv MLP over joints ----
    xt_csum = jnp.sum(x_t, axis=1)                   # (bn, 4, seg, v)
    avg_S = jnp.sum(xt_csum, axis=2) * inv_cs        # (bn, 4, v)
    max_S = jnp.max(jnp.max(x_t, axis=1), axis=2)    # (bn, 4, v)

    pS = jnp.concatenate([avg_S.reshape(B, v),
                          max_S.reshape(B, v)], axis=0)              # (2B, v)
    hS = jnp.maximum(jnp.dot(pS, wS1_ref[...],
                             preferred_element_type=jnp.float32) + bS1_ref[...], 0.0)
    yS = jnp.dot(hS, wS2_ref[...],
                 preferred_element_type=jnp.float32) + bS2_ref[...]  # (2B, v)
    avg_fc = yS[:B]                                  # (B, v)
    max_fc = yS[B:]                                  # (B, v)
    out_S = (avg_fc + max_fc) * 0.5                  # (B, v)

    # ---- adjacency mix: a_cat already holds [a1|a2|a3] * alpha -> ONE dot ----
    A123 = jnp.dot(out_S, a_cat_ref[...],
                   preferred_element_type=jnp.float32)               # (B, 3v)

    # ---- fc_4: Conv2d(1,8,(1,1)) -> ReLU -> Conv2d(8,1,(1,5)) over the 5
    # feature columns [A1, A2, A3, avg_fc, max_fc], vectorized on (5, B, v). ----
    F = jnp.stack((A123[:, 0:v], A123[:, v:2 * v], A123[:, 2 * v:3 * v],
                   avg_fc, max_fc), axis=0)          # (5, B, v)
    acc0 = jnp.zeros((B, v), jnp.float32) + b42_ref[0, 0]
    acc1 = jnp.zeros((B, v), jnp.float32)
    for o in range(8):
        h = jnp.maximum(w41_ref[0, o] * F + b41_ref[0, o], 0.0)      # (5, B, v)
        part = (w42_ref[o, 0] * h[0] + w42_ref[o, 1] * h[1]
                + w42_ref[o, 2] * h[2] + w42_ref[o, 3] * h[3]
                + w42_ref[o, 4] * h[4])
        if o % 2 == 0:
            acc0 = acc0 + part
        else:
            acc1 = acc1 + part

    gate = jax.nn.sigmoid(acc0 + acc1).reshape(bn, nseg, v)          # (bn, 4, v)
    out_ref[...] = x_t * gate[:, None, :, None, :]   # (bn, c, 4, seg, v)


# ----------------------------------------------------------------------------
# Wrapper
# ----------------------------------------------------------------------------
def spatial_attention_forward(x, A, P, *, max_block_bytes=2 * 1024 * 1024):
    n, c, t, v = x.shape
    assert v == V, "SpatialAttention requires V == 50 (fc_S / adjacency shape)"
    assert t % 4 == 0, "time axis must split into 4 segments"
    seg = t // 4

    # ---- fc_A on the 3 adjacency matrices, in plain JAX (tiny: 3x50x50).
    # past_A == 0 so dif_i == a_i and both fc_A input channels fold together.
    # alpha is folded into the concatenated adjacency so the kernel needs one dot.
    w_eff = P['wA1'][:, 0] + P['wA1'][:, 1]                                    # (9,)
    h = jax.nn.relu(w_eff[:, None, None, None] * A[None]
                    + P['bA1'][:, None, None, None])                           # (9,3,v,v)
    a_proc = jnp.einsum('o,oivw->ivw', P['wA2'], h) + P['bA2']                  # (3,v,v)
    a_cat = jnp.concatenate([a_proc[0], a_proc[1], a_proc[2]], axis=1) * P['alpha']  # (v,3v)

    # ---- batch tile so each block (and its double buffers) fits the VMEM budget ----
    bytes_per_sample = c * t * v * x.dtype.itemsize
    bn = max(1, min(n, max_block_bytes // max(bytes_per_sample, 1)))
    while n % bn:
        bn -= 1
    grid = (n // bn,)

    # Contiguous split of T -> (4, seg): pure metadata reshape, no HBM movement.
    x5 = x.reshape(n, c, 4, seg, v)

    VM = pltpu.MemorySpace.VMEM
    SM = pltpu.MemorySpace.SMEM

    def full(shape, space=VM):
        zeros = (0,) * len(shape)
        return pl.BlockSpec(shape, lambda i, _z=zeros: _z, memory_space=space)

    blk = (bn, c, 4, seg, v)
    out5 = pl.pallas_call(
        spatial_attention_kernel,
        out_shape=jax.ShapeDtypeStruct((n, c, 4, seg, v), x.dtype),
        grid=grid,
        in_specs=[pl.BlockSpec(blk, lambda i: (i, 0, 0, 0, 0)),
                  full((v, 3 * v)),
                  full((seg, seg)), full((1, seg)),
                  full((seg, seg)), full((1, seg)),
                  full((v, 10)), full((1, 10)),
                  full((10, v)), full((1, v)),
                  full((1, 8), SM), full((1, 8), SM),
                  full((8, 5), SM), full((1, 1), SM)],
        out_specs=pl.BlockSpec(blk, lambda i: (i, 0, 0, 0, 0)),
        compiler_params=pltpu.CompilerParams(
            dimension_semantics=("parallel",),
            vmem_limit_bytes=48 * 1024 * 1024),
    )(x5, a_cat,
      P['wT1'].T, P['bT1'].reshape(1, seg),
      P['wT2'].T, P['bT2'].reshape(1, seg),
      P['wS1'].T, P['bS1'].reshape(1, 10),
      P['wS2'].T, P['bS2'].reshape(1, v),
      P['w41'].reshape(1, 8), P['b41'].reshape(1, 8),
      P['w42'], P['b42'].reshape(1, 1))

    # Contiguous merge back to (n, c, t, v): again no HBM movement.
    return out5.reshape(n, c, t, v)


# ----------------------------------------------------------------------------
# Pure-JAX reference (mirrors the PyTorch forward semantics exactly)
# ----------------------------------------------------------------------------
def reference_forward(x, A, P):
    n, c, t, v = x.shape
    seg = t // 4

    def mlp(p, w1, b1, w2, b2):  # 1x1-conv MLP in torch (out, in) layout
        return jax.nn.relu(p @ w1.T + b1) @ w2.T + b2

    w_eff = P['wA1'][:, 0] + P['wA1'][:, 1]
    a_proc = []
    for i in range(3):
        h = jax.nn.relu(w_eff[:, None, None] * A[i][None] + P['bA1'][:, None, None])
        a_proc.append(jnp.einsum('o,ovw->vw', P['wA2'], h) + P['bA2'])

    outs = []
    for s in range(4):
        xs = x[:, :, s * seg:(s + 1) * seg, :]
        avg_T = xs.mean(axis=(1, 3)); max_T = xs.max(axis=(1, 3))
        out_T = (mlp(avg_T, P['wT1'], P['bT1'], P['wT2'], P['bT2'])
                 + mlp(max_T, P['wT1'], P['bT1'], P['wT2'], P['bT2'])) / 2
        x_t = xs * out_T[:, None, :, None]
        avg_S = x_t.mean(axis=(1, 2)); max_S = x_t.max(axis=(1, 2))
        avg_fc = mlp(avg_S, P['wS1'], P['bS1'], P['wS2'], P['bS2'])
        max_fc = mlp(max_S, P['wS1'], P['bS1'], P['wS2'], P['bS2'])
        out_S = (avg_fc + max_fc) / 2
        A1 = (out_S @ a_proc[0])[:, :, None] * P['alpha']
        A2 = (out_S @ a_proc[1])[:, :, None] * P['alpha']
        A3 = (out_S @ a_proc[2])[:, :, None] * P['alpha']
        feat = jnp.concatenate([A1, A2, A3, avg_fc[:, :, None], max_fc[:, :, None]], axis=-1)
        h = jax.nn.relu(feat[:, :, :, None] * P['w41'][None, None, None, :] + P['b41'])
        out4 = jnp.einsum('nvko,ok->nv', h, P['w42']) + P['b42']
        gate = jax.nn.sigmoid(out4)
        outs.append(x_t * gate[:, None, None, :])
    return jnp.concatenate(outs, axis=2)


def init_params(key, t):
    seg = t // 4
    ks = iter(jax.random.split(key, 24))

    def w(shape, scale=0.2):
        return jax.random.normal(next(ks), shape, jnp.float32) * scale

    return dict(
        wT1=w((seg, seg)), bT1=w((seg,), 0.1),
        wT2=w((seg, seg)), bT2=w((seg,), 0.1),
        wS1=w((10, V)),    bS1=w((10,), 0.1),
        wS2=w((V, 10)),    bS2=w((V,), 0.1),
        wA1=w((9, 2)),     bA1=w((9,), 0.1),
        wA2=w((9,)),       bA2=w((), 0.1),
        w41=w((8,)),       b41=w((8,), 0.1),
        w42=w((8, 5)),     b42=w((), 0.1),
        alpha=jnp.asarray(0.1, jnp.float32),
    )


if __name__ == "__main__":
    key = jax.random.PRNGKey(0)
    kx, kA, kp = jax.random.split(key, 3)

    # `channel` arg of the module == T (time is permuted into the conv channel
    # dim), so fc_T maps T/4 -> T/4.  V must be 50.
    n, c, t, v = 2, 4, 32, V
    x = jax.random.normal(kx, (n, c, t, v), jnp.float32)
    A = jax.random.normal(kA, (3, v, v), jnp.float32) * 0.3
    P = init_params(kp, t)

    out = spatial_attention_forward(x, A, P)
    out = jax.block_until_ready(out)

    ref = reference_forward(x, A, P)
    assert out.shape == (n, c, t, v), out.shape
    err = float(jnp.max(jnp.abs(out - ref)))
    assert err < 2e-3, f"max abs err {err}"
    print("KERNEL_OK")
</pallas_src>

<mosaic_0001>
module attributes {stable_mosaic.version = 11 : i64} {
  func.func @spatial_attention_kernel(%arg0: i32, %arg1: memref<2x4x4x8x50xf32, #tpu.memory_space<vmem>>, %arg2: memref<50x150xf32, #tpu.memory_space<vmem>>, %arg3: memref<8x8xf32, #tpu.memory_space<vmem>>, %arg4: memref<1x8xf32, #tpu.memory_space<vmem>>, %arg5: memref<8x8xf32, #tpu.memory_space<vmem>>, %arg6: memref<1x8xf32, #tpu.memory_space<vmem>>, %arg7: memref<50x10xf32, #tpu.memory_space<vmem>>, %arg8: memref<1x10xf32, #tpu.memory_space<vmem>>, %arg9: memref<10x50xf32, #tpu.memory_space<vmem>>, %arg10: memref<1x50xf32, #tpu.memory_space<vmem>>, %arg11: memref<1x8xf32, #tpu.memory_space<smem>>, %arg12: memref<1x8xf32, #tpu.memory_space<smem>>, %arg13: memref<8x5xf32, #tpu.memory_space<smem>>, %arg14: memref<1x1xf32, #tpu.memory_space<smem>>, %arg15: memref<2x4x4x8x50xf32, #tpu.memory_space<vmem>>) attributes {dimension_semantics = [#tpu.dimension_semantics<parallel>], iteration_bounds = array<i64: 1>, scalar_prefetch = 0 : i64, scratch_operands = 0 : i64, tpu.core_type = #tpu.core_type<tc>, window_params = [{transform_indices = @transform_0, window_bounds = array<i64: 2, 4, 4, 8, 50>}, {pipeline_mode = #tpu.pipeline_mode<synchronous>, transform_indices = @transform_1, window_bounds = array<i64: 50, 150>}, {pipeline_mode = #tpu.pipeline_mode<synchronous>, transform_indices = @transform_2, window_bounds = array<i64: 8, 8>}, {pipeline_mode = #tpu.pipeline_mode<synchronous>, transform_indices = @transform_3, window_bounds = array<i64: 1, 8>}, {pipeline_mode = #tpu.pipeline_mode<synchronous>, transform_indices = @transform_4, window_bounds = array<i64: 8, 8>}, {pipeline_mode = #tpu.pipeline_mode<synchronous>, transform_indices = @transform_5, window_bounds = array<i64: 1, 8>}, {pipeline_mode = #tpu.pipeline_mode<synchronous>, transform_indices = @transform_6, window_bounds = array<i64: 50, 10>}, {pipeline_mode = #tpu.pipeline_mode<synchronous>, transform_indices = @transform_7, window_bounds = array<i64: 1, 10>}, {pipeline_mode = #tpu.pipeline_mode<synchronous>, transform_indices = @transform_8, window_bounds = array<i64: 10, 50>}, {pipeline_mode = #tpu.pipeline_mode<synchronous>, transform_indices = @transform_9, window_bounds = array<i64: 1, 50>}, {transform_indices = @transform_10, window_bounds = array<i64: 1, 8>}, {transform_indices = @transform_11, window_bounds = array<i64: 1, 8>}, {transform_indices = @transform_12, window_bounds = array<i64: 8, 5>}, {transform_indices = @transform_13, window_bounds = array<i64: 1, 1>}, {transform_indices = @transform_14, window_bounds = array<i64: 2, 4, 4, 8, 50>}]} {
    %c0 = arith.constant 0 : index
    %c0_0 = arith.constant 0 : index
    %c0_1 = arith.constant 0 : index
    %c0_2 = arith.constant 0 : index
    %c0_3 = arith.constant 0 : index
    %0 = vector.load %arg1[%c0, %c0_0, %c0_1, %c0_2, %c0_3] : memref<2x4x4x8x50xf32, #tpu.memory_space<vmem>>, vector<2x4x4x8x50xf32>
    %cst = arith.constant dense<0.000000e+00> : vector<2x4x8x50xf32>
    %1 = vector.multi_reduction <add>, %0, %cst [1] : vector<2x4x4x8x50xf32> to vector<2x4x8x50xf32>
    %cst_4 = arith.constant dense<0.000000e+00> : vector<2x4x8xf32>
    %2 = vector.multi_reduction <add>, %1, %cst_4 [3] : vector<2x4x8x50xf32> to vector<2x4x8xf32>
    %cst_5 = arith.constant 5.000000e-03 : f32
    %3 = vector.broadcast %cst_5 : f32 to vector<2x4x8xf32>
    %4 = arith.mulf %2, %3 : vector<2x4x8xf32>
    %cst_6 = arith.constant dense<0xFF800000> : vector<2x4x8x50xf32>
    %5 = vector.multi_reduction <maximumf>, %0, %cst_6 [1] : vector<2x4x4x8x50xf32> to vector<2x4x8x50xf32>
    %cst_7 = arith.constant dense<0xFF800000> : vector<2x4x8xf32>
    %6 = vector.multi_reduction <maximumf>, %5, %cst_7 [3] : vector<2x4x8x50xf32> to vector<2x4x8xf32>
    %7 = vector.shape_cast %4 : vector<2x4x8xf32> to vector<8x8xf32>
    %8 = vector.shape_cast %6 : vector<2x4x8xf32> to vector<8x8xf32>
    %9 = tpu.concatenate %7, %8 in 0 : vector<8x8xf32>, vector<8x8xf32> -> vector<16x8xf32>
    %c0_8 = arith.constant 0 : index
    %c0_9 = arith.constant 0 : index
    %10 = vector.load %arg3[%c0_8, %c0_9] : memref<8x8xf32, #tpu.memory_space<vmem>>, vector<8x8xf32>
    %cst_10 = arith.constant dense<0.000000e+00> : vector<16x8xf32>
    %11 = tpu.matmul %9, %10, %cst_10 {dimension_numbers = #tpu.dot_dimension_numbers<[1], [0], [0], [1], [0, 0, 1, 1], [], []>} : vector<16x8xf32>, vector<8x8xf32>, vector<16x8xf32> -> vector<16x8xf32>
    %c0_11 = arith.constant 0 : index
    %c0_12 = arith.constant 0 : index
    %12 = vector.load %arg4[%c0_11, %c0_12] : memref<1x8xf32, #tpu.memory_space<vmem>>, vector<1x8xf32>
    %13 = vector.broadcast %12 : vector<1x8xf32> to vector<16x8xf32>
    %14 = arith.addf %11, %13 : vector<16x8xf32>
    %cst_13 = arith.constant 0.000000e+00 : f32
    %15 = vector.broadcast %cst_13 : f32 to vector<16x8xf32>
    %16 = arith.maximumf %14, %15 : vector<16x8xf32>
    %c0_14 = arith.constant 0 : index
    %c0_15 = arith.constant 0 : index
    %17 = vector.load %arg5[%c0_14, %c0_15] : memref<8x8xf32, #tpu.memory_space<vmem>>, vector<8x8xf32>
    %cst_16 = arith.constant dense<0.000000e+00> : vector<16x8xf32>
    %18 = tpu.matmul %16, %17, %cst_16 {dimension_numbers = #tpu.dot_dimension_numbers<[1], [0], [0], [1], [0, 0, 1, 1], [], []>} : vector<16x8xf32>, vector<8x8xf32>, vector<16x8xf32> -> vector<16x8xf32>
    %c0_17 = arith.constant 0 : index
    %c0_18 = arith.constant 0 : index
    %19 = vector.load %arg6[%c0_17, %c0_18] : memref<1x8xf32, #tpu.memory_space<vmem>>, vector<1x8xf32>
    %20 = vector.broadcast %19 : vector<1x8xf32> to vector<16x8xf32>
    %21 = arith.addf %18, %20 : vector<16x8xf32>
    %22 = vector.extract_strided_slice %21 {offsets = [0, 0], sizes = [8, 8], strides = [1, 1]} : vector<16x8xf32> to vector<8x8xf32>
    %23 = vector.extract_strided_slice %21 {offsets = [8, 0], sizes = [8, 8], strides = [1, 1]} : vector<16x8xf32> to vector<8x8xf32>
    %24 = arith.addf %22, %23 : vector<8x8xf32>
    %cst_19 = arith.constant 5.000000e-01 : f32
    %25 = vector.broadcast %cst_19 : f32 to vector<8x8xf32>
    %26 = arith.mulf %24, %25 : vector<8x8xf32>
    %27 = vector.shape_cast %26 : vector<8x8xf32> to vector<2x4x8xf32>
    %28 = vector.shape_cast %27 : vector<2x4x8xf32> to vector<2x1x4x8x1xf32>
    %29 = vector.broadcast %28 : vector<2x1x4x8x1xf32> to vector<2x4x4x8x50xf32>
    %30 = arith.mulf %0, %29 : vector<2x4x4x8x50xf32>
    %cst_20 = arith.constant dense<0.000000e+00> : vector<2x4x8x50xf32>
    %31 = vector.multi_reduction <add>, %30, %cst_20 [1] : vector<2x4x4x8x50xf32> to vector<2x4x8x50xf32>
    %cst_21 = arith.constant dense<0.000000e+00> : vector<2x4x50xf32>
    %32 = vector.multi_reduction <add>, %31, %cst_21 [2] : vector<2x4x8x50xf32> to vector<2x4x50xf32>
    %cst_22 = arith.constant 3.125000e-02 : f32
    %33 = vector.broadcast %cst_22 : f32 to vector<2x4x50xf32>
    %34 = arith.mulf %32, %33 : vector<2x4x50xf32>
    %cst_23 = arith.constant dense<0xFF800000> : vector<2x4x8x50xf32>
    %35 = vector.multi_reduction <maximumf>, %30, %cst_23 [1] : vector<2x4x4x8x50xf32> to vector<2x4x8x50xf32>
    %cst_24 = arith.constant dense<0xFF800000> : vector<2x4x50xf32>
    %36 = vector.multi_reduction <maximumf>, %35, %cst_24 [2] : vector<2x4x8x50xf32> to vector<2x4x50xf32>
    %37 = vector.shape_cast %34 : vector<2x4x50xf32> to vector<8x50xf32>
    %38 = vector.shape_cast %36 : vector<2x4x50xf32> to vector<8x50xf32>
    %39 = tpu.concatenate %37, %38 in 0 : vector<8x50xf32>, vector<8x50xf32> -> vector<16x50xf32>
    %c0_25 = arith.constant 0 : index
    %c0_26 = arith.constant 0 : index
    %40 = vector.load %arg7[%c0_25, %c0_26] : memref<50x10xf32, #tpu.memory_space<vmem>>, vector<50x10xf32>
    %cst_27 = arith.constant dense<0.000000e+00> : vector<16x10xf32>
    %41 = tpu.matmul %39, %40, %cst_27 {dimension_numbers = #tpu.dot_dimension_numbers<[1], [0], [0], [1], [0, 0, 1, 1], [], []>} : vector<16x50xf32>, vector<50x10xf32>, vector<16x10xf32> -> vector<16x10xf32>
    %c0_28 = arith.constant 0 : index
    %c0_29 = arith.constant 0 : index
    %42 = vector.load %arg8[%c0_28, %c0_29] : memref<1x10xf32, #tpu.memory_space<vmem>>, vector<1x10xf32>
    %43 = vector.broadcast %42 : vector<1x10xf32> to vector<16x10xf32>
    %44 = arith.addf %41, %43 : vector<16x10xf32>
    %cst_30 = arith.constant 0.000000e+00 : f32
    %45 = vector.broadcast %cst_30 : f32 to vector<16x10xf32>
    %46 = arith.maximumf %44, %45 : vector<16x10xf32>
    %c0_31 = arith.constant 0 : index
    %c0_32 = arith.constant 0 : index
    %47 = vector.load %arg9[%c0_31, %c0_32] : memref<10x50xf32, #tpu.memory_space<vmem>>, vector<10x50xf32>
    %cst_33 = arith.constant dense<0.000000e+00> : vector<16x50xf32>
    %48 = tpu.matmul %46, %47, %cst_33 {dimension_numbers = #tpu.dot_dimension_numbers<[1], [0], [0], [1], [0, 0, 1, 1], [], []>} : vector<16x10xf32>, vector<10x50xf32>, vector<16x50xf32> -> vector<16x50xf32>
    %c0_34 = arith.constant 0 : index
    %c0_35 = arith.constant 0 : index
    %49 = vector.load %arg10[%c0_34, %c0_35] : memref<1x50xf32, #tpu.memory_space<vmem>>, vector<1x50xf32>
    %50 = vector.broadcast %49 : vector<1x50xf32> to vector<16x50xf32>
    %51 = arith.addf %48, %50 : vector<16x50xf32>
    %52 = vector.extract_strided_slice %51 {offsets = [0, 0], sizes = [8, 50], strides = [1, 1]} : vector<16x50xf32> to vector<8x50xf32>
    %53 = vector.extract_strided_slice %51 {offsets = [8, 0], sizes = [8, 50], strides = [1, 1]} : vector<16x50xf32> to vector<8x50xf32>
    %54 = arith.addf %52, %53 : vector<8x50xf32>
    %cst_36 = arith.constant 5.000000e-01 : f32
    %55 = vector.broadcast %cst_36 : f32 to vector<8x50xf32>
    %56 = arith.mulf %54, %55 : vector<8x50xf32>
    %c0_37 = arith.constant 0 : index
    %c0_38 = arith.constant 0 : index
    %57 = vector.load %arg2[%c0_37, %c0_38] : memref<50x150xf32, #tpu.memory_space<vmem>>, vector<50x150xf32>
    %cst_39 = arith.constant dense<0.000000e+00> : vector<8x150xf32>
    %58 = tpu.matmul %56, %57, %cst_39 {dimension_numbers = #tpu.dot_dimension_numbers<[1], [0], [0], [1], [0, 0, 1, 1], [], []>} : vector<8x50xf32>, vector<50x150xf32>, vector<8x150xf32> -> vector<8x150xf32>
    %59 = vector.extract_strided_slice %58 {offsets = [0, 0], sizes = [8, 50], strides = [1, 1]} : vector<8x150xf32> to vector<8x50xf32>
    %60 = vector.extract_strided_slice %58 {offsets = [0, 50], sizes = [8, 50], strides = [1, 1]} : vector<8x150xf32> to vector<8x50xf32>
    %61 = vector.extract_strided_slice %58 {offsets = [0, 100], sizes = [8, 50], strides = [1, 1]} : vector<8x150xf32> to vector<8x50xf32>
    %62 = vector.shape_cast %59 : vector<8x50xf32> to vector<1x8x50xf32>
    %63 = vector.shape_cast %60 : vector<8x50xf32> to vector<1x8x50xf32>
    %64 = vector.shape_cast %61 : vector<8x50xf32> to vector<1x8x50xf32>
    %65 = vector.shape_cast %52 : vector<8x50xf32> to vector<1x8x50xf32>
    %66 = vector.shape_cast %53 : vector<8x50xf32> to vector<1x8x50xf32>
    %67 = tpu.concatenate %62, %63, %64, %65, %66 in 0 : vector<1x8x50xf32>, vector<1x8x50xf32>, vector<1x8x50xf32>, vector<1x8x50xf32>, vector<1x8x50xf32> -> vector<5x8x50xf32>
    %cst_40 = arith.constant 0.000000e+00 : f32
    %68 = vector.broadcast %cst_40 : f32 to vector<8x50xf32>
    %c0_41 = arith.constant 0 : index
    %c0_42 = arith.constant 0 : index
    %69 = memref.load %arg14[%c0_41, %c0_42] : memref<1x1xf32, #tpu.memory_space<smem>>
    %70 = vector.broadcast %69 : f32 to vector<8x50xf32>
    %71 = arith.addf %68, %70 : vector<8x50xf32>
    %cst_43 = arith.constant 0.000000e+00 : f32
    %72 = vector.broadcast %cst_43 : f32 to vector<8x50xf32>
    %c0_44 = arith.constant 0 : index
    %c0_45 = arith.constant 0 : index
    %73 = memref.load %arg11[%c0_44, %c0_45] : memref<1x8xf32, #tpu.memory_space<smem>>
    %74 = vector.broadcast %73 : f32 to vector<5x8x50xf32>
    %75 = arith.mulf %74, %67 : vector<5x8x50xf32>
    %c0_46 = arith.constant 0 : index
    %c0_47 = arith.constant 0 : index
    %76 = memref.load %arg12[%c0_46, %c0_47] : memref<1x8xf32, #tpu.memory_space<smem>>
    %77 = vector.broadcast %76 : f32 to vector<5x8x50xf32>
    %78 = arith.addf %75, %77 : vector<5x8x50xf32>
    %cst_48 = arith.constant 0.000000e+00 : f32
    %79 = vector.broadcast %cst_48 : f32 to vector<5x8x50xf32>
    %80 = arith.maximumf %78, %79 : vector<5x8x50xf32>
    %c0_49 = arith.constant 0 : index
    %c0_50 = arith.constant 0 : index
    %81 = memref.load %arg13[%c0_49, %c0_50] : memref<8x5xf32, #tpu.memory_space<smem>>
    %82 = vector.extract_strided_slice %80 {offsets = [0, 0, 0], sizes = [1, 8, 50], strides = [1, 1, 1]} : vector<5x8x50xf32> to vector<1x8x50xf32>
    %83 = vector.shape_cast %82 : vector<1x8x50xf32> to vector<8x50xf32>
    %84 = vector.broadcast %81 : f32 to vector<8x50xf32>
    %85 = arith.mulf %84, %83 : vector<8x50xf32>
    %c0_51 = arith.constant 0 : index
    %c1 = arith.constant 1 : index
    %86 = memref.load %arg13[%c0_51, %c1] : memref<8x5xf32, #tpu.memory_space<smem>>
    %87 = vector.extract_strided_slice %80 {offsets = [1, 0, 0], sizes = [1, 8, 50], strides = [1, 1, 1]} : vector<5x8x50xf32> to vector<1x8x50xf32>
    %88 = vector.shape_cast %87 : vector<1x8x50xf32> to vector<8x50xf32>
    %89 = vector.broadcast %86 : f32 to vector<8x50xf32>
    %90 = arith.mulf %89, %88 : vector<8x50xf32>
    %91 = arith.addf %85, %90 : vector<8x50xf32>
    %c0_52 = arith.constant 0 : index
    %c2 = arith.constant 2 : index
    %92 = memref.load %arg13[%c0_52, %c2] : memref<8x5xf32, #tpu.memory_space<smem>>
    %93 = vector.extract_strided_slice %80 {offsets = [2, 0, 0], sizes = [1, 8, 50], strides = [1, 1, 1]} : vector<5x8x50xf32> to vector<1x8x50xf32>
    %94 = vector.shape_cast %93 : vector<1x8x50xf32> to vector<8x50xf32>
    %95 = vector.broadcast %92 : f32 to vector<8x50xf32>
    %96 = arith.mulf %95, %94 : vector<8x50xf32>
    %97 = arith.addf %91, %96 : vector<8x50xf32>
    %c0_53 = arith.constant 0 : index
    %c3 = arith.constant 3 : index
    %98 = memref.load %arg13[%c0_53, %c3] : memref<8x5xf32, #tpu.memory_space<smem>>
    %99 = vector.extract_strided_slice %80 {offsets = [3, 0, 0], sizes = [1, 8, 50], strides = [1, 1, 1]} : vector<5x8x50xf32> to vector<1x8x50xf32>
    %100 = vector.shape_cast %99 : vector<1x8x50xf32> to vector<8x50xf32>
    %101 = vector.broadcast %98 : f32 to vector<8x50xf32>
    %102 = arith.mulf %101, %100 : vector<8x50xf32>
    %103 = arith.addf %97, %102 : vector<8x50xf32>
    %c0_54 = arith.constant 0 : index
    %c4 = arith.constant 4 : index
    %104 = memref.load %arg13[%c0_54, %c4] : memref<8x5xf32, #tpu.memory_space<smem>>
    %105 = vector.extract_strided_slice %80 {offsets = [4, 0, 0], sizes = [1, 8, 50], strides = [1, 1, 1]} : vector<5x8x50xf32> to vector<1x8x50xf32>
    %106 = vector.shape_cast %105 : vector<1x8x50xf32> to vector<8x50xf32>
    %107 = vector.broadcast %104 : f32 to vector<8x50xf32>
    %108 = arith.mulf %107, %106 : vector<8x50xf32>
    %109 = arith.addf %103, %108 : vector<8x50xf32>
    %110 = arith.addf %71, %109 : vector<8x50xf32>
    %c0_55 = arith.constant 0 : index
    %c1_56 = arith.constant 1 : index
    %111 = memref.load %arg11[%c0_55, %c1_56] : memref<1x8xf32, #tpu.memory_space<smem>>
    %112 = vector.broadcast %111 : f32 to vector<5x8x50xf32>
    %113 = arith.mulf %112, %67 : vector<5x8x50xf32>
    %c0_57 = arith.constant 0 : index
    %c1_58 = arith.constant 1 : index
    %114 = memref.load %arg12[%c0_57, %c1_58] : memref<1x8xf32, #tpu.memory_space<smem>>
    %115 = vector.broadcast %114 : f32 to vector<5x8x50xf32>
    %116 = arith.addf %113, %115 : vector<5x8x50xf32>
    %cst_59 = arith.constant 0.000000e+00 : f32
    %117 = vector.broadcast %cst_59 : f32 to vector<5x8x50xf32>
    %118 = arith.maximumf %116, %117 : vector<5x8x50xf32>
    %c1_60 = arith.constant 1 : index
    %c0_61 = arith.constant 0 : index
    %119 = memref.load %arg13[%c1_60, %c0_61] : memref<8x5xf32, #tpu.memory_space<smem>>
    %120 = vector.extract_strided_slice %118 {offsets = [0, 0, 0], sizes = [1, 8, 50], strides = [1, 1, 1]} : vector<5x8x50xf32> to vector<1x8x50xf32>
    %121 = vector.shape_cast %120 : vector<1x8x50xf32> to vector<8x50xf32>
    %122 = vector.broadcast %119 : f32 to vector<8x50xf32>
    %123 = arith.mulf %122, %121 : vector<8x50xf32>
    %c1_62 = arith.constant 1 : index
    %c1_63 = arith.constant 1 : index
    %124 = memref.load %arg13[%c1_62, %c1_63] : memref<8x5xf32, #tpu.memory_space<smem>>
    %125 = vector.extract_strided_slice %118 {offsets = [1, 0, 0], sizes = [1, 8, 50], strides = [1, 1, 1]} : vector<5x8x50xf32> to vector<1x8x50xf32>
    %126 = vector.shape_cast %125 : vector<1x8x50xf32> to vector<8x50xf32>
    %127 = vector.broadcast %124 : f32 to vector<8x50xf32>
    %128 = arith.mulf %127, %126 : vector<8x50xf32>
    %129 = arith.addf %123, %128 : vector<8x50xf32>
    %c1_64 = arith.constant 1 : index
    %c2_65 = arith.constant 2 : index
    %130 = memref.load %arg13[%c1_64, %c2_65] : memref<8x5xf32, #tpu.memory_space<smem>>
    %131 = vector.extract_strided_slice %118 {offsets = [2, 0, 0], sizes = [1, 8, 50], strides = [1, 1, 1]} : vector<5x8x50xf32> to vector<1x8x50xf32>
    %132 = vector.shape_cast %131 : vector<1x8x50xf32> to vector<8x50xf32>
    %133 = vector.broadcast %130 : f32 to vector<8x50xf32>
    %134 = arith.mulf %133, %132 : vector<8x50xf32>
    %135 = arith.addf %129, %134 : vector<8x50xf32>
    %c1_66 = arith.constant 1 : index
    %c3_67 = arith.constant 3 : index
    %136 = memref.load %arg13[%c1_66, %c3_67] : memref<8x5xf32, #tpu.memory_space<smem>>
    %137 = vector.extract_strided_slice %118 {offsets = [3, 0, 0], sizes = [1, 8, 50], strides = [1, 1, 1]} : vector<5x8x50xf32> to vector<1x8x50xf32>
    %138 = vector.shape_cast %137 : vector<1x8x50xf32> to vector<8x50xf32>
    %139 = vector.broadcast %136 : f32 to vector<8x50xf32>
    %140 = arith.mulf %139, %138 : vector<8x50xf32>
    %141 = arith.addf %135, %140 : vector<8x50xf32>
    %c1_68 = arith.constant 1 : index
    %c4_69 = arith.constant 4 : index
    %142 = memref.load %arg13[%c1_68, %c4_69] : memref<8x5xf32, #tpu.memory_space<smem>>
    %143 = vector.extract_strided_slice %118 {offsets = [4, 0, 0], sizes = [1, 8, 50], strides = [1, 1, 1]} : vector<5x8x50xf32> to vector<1x8x50xf32>
    %144 = vector.shape_cast %143 : vector<1x8x50xf32> to vector<8x50xf32>
    %145 = vector.broadcast %142 : f32 to vector<8x50xf32>
    %146 = arith.mulf %145, %144 : vector<8x50xf32>
    %147 = arith.addf %141, %146 : vector<8x50xf32>
    %148 = arith.addf %72, %147 : vector<8x50xf32>
    %c0_70 = arith.constant 0 : index
    %c2_71 = arith.constant 2 : index
    %149 = memref.load %arg11[%c0_70, %c2_71] : memref<1x8xf32, #tpu.memory_space<smem>>
    %150 = vector.broadcast %149 : f32 to vector<5x8x50xf32>
    %151 = arith.mulf %150, %67 : vector<5x8x50xf32>
    %c0_72 = arith.constant 0 : index
    %c2_73 = arith.constant 2 : index
    %152 = memref.load %arg12[%c0_72, %c2_73] : memref<1x8xf32, #tpu.memory_space<smem>>
    %153 = vector.broadcast %152 : f32 to vector<5x8x50xf32>
    %154 = arith.addf %151, %153 : vector<5x8x50xf32>
    %cst_74 = arith.constant 0.000000e+00 : f32
    %155 = vector.broadcast %cst_74 : f32 to vector<5x8x50xf32>
    %156 = arith.maximumf %154, %155 : vector<5x8x50xf32>
    %c2_75 = arith.constant 2 : index
    %c0_76 = arith.constant 0 : index
    %157 = memref.load %arg13[%c2_75, %c0_76] : memref<8x5xf32, #tpu.memory_space<smem>>
    %158 = vector.extract_strided_slice %156 {offsets = [0, 0, 0], sizes = [1, 8, 50], strides = [1, 1, 1]} : vector<5x8x50xf32> to vector<1x8x50xf32>
    %159 = vector.shape_cast %158 : vector<1x8x50xf32> to vector<8x50xf32>
    %160 = vector.broadcast %157 : f32 to vector<8x50xf32>
    %161 = arith.mulf %160, %159 : vector<8x50xf32>
    %c2_77 = arith.constant 2 : index
    %c1_78 = arith.constant 1 : index
    %162 = memref.load %arg13[%c2_77, %c1_78] : memref<8x5xf32, #tpu.memory_space<smem>>
    %163 = vector.extract_strided_slice %156 {offsets = [1, 0, 0], sizes = [1, 8, 50], strides = [1, 1, 1]} : vector<5x8x50xf32> to vector<1x8x50xf32>
    %164 = vector.shape_cast %163 : vector<1x8x50xf32> to vector<8x50xf32>
    %165 = vector.broadcast %162 : f32 to vector<8x50xf32>
    %166 = arith.mulf %165, %164 : vector<8x50xf32>
    %167 = arith.addf %161, %166 : vector<8x50xf32>
    %c2_79 = arith.constant 2 : index
    %c2_80 = arith.constant 2 : index
    %168 = memref.load %arg13[%c2_79, %c2_80] : memref<8x5xf32, #tpu.memory_space<smem>>
    %169 = vector.extract_strided_slice %156 {offsets = [2, 0, 0], sizes = [1, 8, 50], strides = [1, 1, 1]} : vector<5x8x50xf32> to vector<1x8x50xf32>
    %170 = vector.shape_cast %169 : vector<1x8x50xf32> to vector<8x50xf32>
    %171 = vector.broadcast %168 : f32 to vector<8x50xf32>
    %172 = arith.mulf %171, %170 : vector<8x50xf32>
    %173 = arith.addf %167, %172 : vector<8x50xf32>
    %c2_81 = arith.constant 2 : index
    %c3_82 = arith.constant 3 : index
    %174 = memref.load %arg13[%c2_81, %c3_82] : memref<8x5xf32, #tpu.memory_space<smem>>
    %175 = vector.extract_strided_slice %156 {offsets = [3, 0, 0], sizes = [1, 8, 50], strides = [1, 1, 1]} : vector<5x8x50xf32> to vector<1x8x50xf32>
    %176 = vector.shape_cast %175 : vector<1x8x50xf32> to vector<8x50xf32>
    %177 = vector.broadcast %174 : f32 to vector<8x50xf32>
    %178 = arith.mulf %177, %176 : vector<8x50xf32>
    %179 = arith.addf %173, %178 : vector<8x50xf32>
    %c2_83 = arith.constant 2 : index
    %c4_84 = arith.constant 4 : index
    %180 = memref.load %arg13[%c2_83, %c4_84] : memref<8x5xf32, #tpu.memory_space<smem>>
    %181 = vector.extract_strided_slice %156 {offsets = [4, 0, 0], sizes = [1, 8, 50], strides = [1, 1, 1]} : vector<5x8x50xf32> to vector<1x8x50xf32>
    %182 = vector.shape_cast %181 : vector<1x8x50xf32> to vector<8x50xf32>
    %183 = vector.broadcast %180 : f32 to vector<8x50xf32>
    %184 = arith.mulf %183, %182 : vector<8x50xf32>
    %185 = arith.addf %179, %184 : vector<8x50xf32>
    %186 = arith.addf %110, %185 : vector<8x50xf32>
    %c0_85 = arith.constant 0 : index
    %c3_86 = arith.constant 3 : index
    %187 = memref.load %arg11[%c0_85, %c3_86] : memref<1x8xf32, #tpu.memory_space<smem>>
    %188 = vector.broadcast %187 : f32 to vector<5x8x50xf32>
    %189 = arith.mulf %188, %67 : vector<5x8x50xf32>
    %c0_87 = arith.constant 0 : index
    %c3_88 = arith.constant 3 : index
    %190 = memref.load %arg12[%c0_87, %c3_88] : memref<1x8xf32, #tpu.memory_space<smem>>
    %191 = vector.broadcast %190 : f32 to vector<5x8x50xf32>
    %192 = arith.addf %189, %191 : vector<5x8x50xf32>
    %cst_89 = arith.constant 0.000000e+00 : f32
    %193 = vector.broadcast %cst_89 : f32 to vector<5x8x50xf32>
    %194 = arith.maximumf %192, %193 : vector<5x8x50xf32>
    %c3_90 = arith.constant 3 : index
    %c0_91 = arith.constant 0 : index
    %195 = memref.load %arg13[%c3_90, %c0_91] : memref<8x5xf32, #tpu.memory_space<smem>>
    %196 = vector.extract_strided_slice %194 {offsets = [0, 0, 0], sizes = [1, 8, 50], strides = [1, 1, 1]} : vector<5x8x50xf32> to vector<1x8x50xf32>
    %197 = vector.shape_cast %196 : vector<1x8x50xf32> to vector<8x50xf32>
    %198 = vector.broadcast %195 : f32 to vector<8x50xf32>
    %199 = arith.mulf %198, %197 : vector<8x50xf32>
    %c3_92 = arith.constant 3 : index
    %c1_93 = arith.constant 1 : index
    %200 = memref.load %arg13[%c3_92, %c1_93] : memref<8x5xf32, #tpu.memory_space<smem>>
    %201 = vector.extract_strided_slice %194 {offsets = [1, 0, 0], sizes = [1, 8, 50], strides = [1, 1, 1]} : vector<5x8x50xf32> to vector<1x8x50xf32>
    %202 = vector.shape_cast %201 : vector<1x8x50xf32> to vector<8x50xf32>
    %203 = vector.broadcast %200 : f32 to vector<8x50xf32>
    %204 = arith.mulf %203, %202 : vector<8x50xf32>
    %205 = arith.addf %199, %204 : vector<8x50xf32>
    %c3_94 = arith.constant 3 : index
    %c2_95 = arith.constant 2 : index
    %206 = memref.load %arg13[%c3_94, %c2_95] : memref<8x5xf32, #tpu.memory_space<smem>>
    %207 = vector.extract_strided_slice %194 {offsets = [2, 0, 0], sizes = [1, 8, 50], strides = [1, 1, 1]} : vector<5x8x50xf32> to vector<1x8x50xf32>
    %208 = vector.shape_cast %207 : vector<1x8x50xf32> to vector<8x50xf32>
    %209 = vector.broadcast %206 : f32 to vector<8x50xf32>
    %210 = arith.mulf %209, %208 : vector<8x50xf32>
    %211 = arith.addf %205, %210 : vector<8x50xf32>
    %c3_96 = arith.constant 3 : index
    %c3_97 = arith.constant 3 : index
    %212 = memref.load %arg13[%c3_96, %c3_97] : memref<8x5xf32, #tpu.memory_space<smem>>
    %213 = vector.extract_strided_slice %194 {offsets = [3, 0, 0], sizes = [1, 8, 50], strides = [1, 1, 1]} : vector<5x8x50xf32> to vector<1x8x50xf32>
    %214 = vector.shape_cast %213 : vector<1x8x50xf32> to vector<8x50xf32>
    %215 = vector.broadcast %212 : f32 to vector<8x50xf32>
    %216 = arith.mulf %215, %214 : vector<8x50xf32>
    %217 = arith.addf %211, %216 : vector<8x50xf32>
    %c3_98 = arith.constant 3 : index
    %c4_99 = arith.constant 4 : index
    %218 = memref.load %arg13[%c3_98, %c4_99] : memref<8x5xf32, #tpu.memory_space<smem>>
    %219 = vector.extract_strided_slice %194 {offsets = [4, 0, 0], sizes = [1, 8, 50], strides = [1, 1, 1]} : vector<5x8x50xf32> to vector<1x8x50xf32>
    %220 = vector.shape_cast %219 : vector<1x8x50xf32> to vector<8x50xf32>
    %221 = vector.broadcast %218 : f32 to vector<8x50xf32>
    %222 = arith.mulf %221, %220 : vector<8x50xf32>
    %223 = arith.addf %217, %222 : vector<8x50xf32>
    %224 = arith.addf %148, %223 : vector<8x50xf32>
    %c0_100 = arith.constant 0 : index
    %c4_101 = arith.constant 4 : index
    %225 = memref.load %arg11[%c0_100, %c4_101] : memref<1x8xf32, #tpu.memory_space<smem>>
    %226 = vector.broadcast %225 : f32 to vector<5x8x50xf32>
    %227 = arith.mulf %226, %67 : vector<5x8x50xf32>
    %c0_102 = arith.constant 0 : index
    %c4_103 = arith.constant 4 : index
    %228 = memref.load %arg12[%c0_102, %c4_103] : memref<1x8xf32, #tpu.memory_space<smem>>
    %229 = vector.broadcast %228 : f32 to vector<5x8x50xf32>
    %230 = arith.addf %227, %229 : vector<5x8x50xf32>
    %cst_104 = arith.constant 0.000000e+00 : f32
    %231 = vector.broadcast %cst_104 : f32 to vector<5x8x50xf32>
    %232 = arith.maximumf %230, %231 : vector<5x8x50xf32>
    %c4_105 = arith.constant 4 : index
    %c0_106 = arith.constant 0 : index
    %233 = memref.load %arg13[%c4_105, %c0_106] : memref<8x5xf32, #tpu.memory_space<smem>>
    %234 = vector.extract_strided_slice %232 {offsets = [0, 0, 0], sizes = [1, 8, 50], strides = [1, 1, 1]} : vector<5x8x50xf32> to vector<1x8x50xf32>
    %235 = vector.shape_cast %234 : vector<1x8x50xf32> to vector<8x50xf32>
    %236 = vector.broadcast %233 : f32 to vector<8x50xf32>
    %237 = arith.mulf %236, %235 : vector<8x50xf32>
    %c4_107 = arith.constant 4 : index
    %c1_108 = arith.constant 1 : index
    %238 = memref.load %arg13[%c4_107, %c1_108] : memref<8x5xf32, #tpu.memory_space<smem>>
    %239 = vector.extract_strided_slice %232 {offsets = [1, 0, 0], sizes = [1, 8, 50], strides = [1, 1, 1]} : vector<5x8x50xf32> to vector<1x8x50xf32>
    %240 = vector.shape_cast %239 : vector<1x8x50xf32> to vector<8x50xf32>
    %241 = vector.broadcast %238 : f32 to vector<8x50xf32>
    %242 = arith.mulf %241, %240 : vector<8x50xf32>
    %243 = arith.addf %237, %242 : vector<8x50xf32>
    %c4_109 = arith.constant 4 : index
    %c2_110 = arith.constant 2 : index
    %244 = memref.load %arg13[%c4_109, %c2_110] : memref<8x5xf32, #tpu.memory_space<smem>>
    %245 = vector.extract_strided_slice %232 {offsets = [2, 0, 0], sizes = [1, 8, 50], strides = [1, 1, 1]} : vector<5x8x50xf32> to vector<1x8x50xf32>
    %246 = vector.shape_cast %245 : vector<1x8x50xf32> to vector<8x50xf32>
    %247 = vector.broadcast %244 : f32 to vector<8x50xf32>
    %248 = arith.mulf %247, %246 : vector<8x50xf32>
    %249 = arith.addf %243, %248 : vector<8x50xf32>
    %c4_111 = arith.constant 4 : index
    %c3_112 = arith.constant 3 : index
    %250 = memref.load %arg13[%c4_111, %c3_112] : memref<8x5xf32, #tpu.memory_space<smem>>
    %251 = vector.extract_strided_slice %232 {offsets = [3, 0, 0], sizes = [1, 8, 50], strides = [1, 1, 1]} : vector<5x8x50xf32> to vector<1x8x50xf32>
    %252 = vector.shape_cast %251 : vector<1x8x50xf32> to vector<8x50xf32>
    %253 = vector.broadcast %250 : f32 to vector<8x50xf32>
    %254 = arith.mulf %253, %252 : vector<8x50xf32>
    %255 = arith.addf %249, %254 : vector<8x50xf32>
    %c4_113 = arith.constant 4 : index
    %c4_114 = arith.constant 4 : index
    %256 = memref.load %arg13[%c4_113, %c4_114] : memref<8x5xf32, #tpu.memory_space<smem>>
    %257 = vector.extract_strided_slice %232 {offsets = [4, 0, 0], sizes = [1, 8, 50], strides = [1, 1, 1]} : vector<5x8x50xf32> to vector<1x8x50xf32>
    %258 = vector.shape_cast %257 : vector<1x8x50xf32> to vector<8x50xf32>
    %259 = vector.broadcast %256 : f32 to vector<8x50xf32>
    %260 = arith.mulf %259, %258 : vector<8x50xf32>
    %261 = arith.addf %255, %260 : vector<8x50xf32>
    %262 = arith.addf %186, %261 : vector<8x50xf32>
    %c0_115 = arith.constant 0 : index
    %c5 = arith.constant 5 : index
    %263 = memref.load %arg11[%c0_115, %c5] : memref<1x8xf32, #tpu.memory_space<smem>>
    %264 = vector.broadcast %263 : f32 to vector<5x8x50xf32>
    %265 = arith.mulf %264, %67 : vector<5x8x50xf32>
    %c0_116 = arith.constant 0 : index
    %c5_117 = arith.constant 5 : index
    %266 = memref.load %arg12[%c0_116, %c5_117] : memref<1x8xf32, #tpu.memory_space<smem>>
    %267 = vector.broadcast %266 : f32 to vector<5x8x50xf32>
    %268 = arith.addf %265, %267 : vector<5x8x50xf32>
    %cst_118 = arith.constant 0.000000e+00 : f32
    %269 = vector.broadcast %cst_118 : f32 to vector<5x8x50xf32>
    %270 = arith.maximumf %268, %269 : vector<5x8x50xf32>
    %c5_119 = arith.constant 5 : index
    %c0_120 = arith.constant 0 : index
    %271 = memref.load %arg13[%c5_119, %c0_120] : memref<8x5xf32, #tpu.memory_space<smem>>
    %272 = vector.extract_strided_slice %270 {offsets = [0, 0, 0], sizes = [1, 8, 50], strides = [1, 1, 1]} : vector<5x8x50xf32> to vector<1x8x50xf32>
    %273 = vector.shape_cast %272 : vector<1x8x50xf32> to vector<8x50xf32>
    %274 = vector.broadcast %271 : f32 to vector<8x50xf32>
    %275 = arith.mulf %274, %273 : vector<8x50xf32>
    %c5_121 = arith.constant 5 : index
    %c1_122 = arith.constant 1 : index
    %276 = memref.load %arg13[%c5_121, %c1_122] : memref<8x5xf32, #tpu.memory_space<smem>>
    %277 = vector.extract_strided_slice %270 {offsets = [1, 0, 0], sizes = [1, 8, 50], strides = [1, 1, 1]} : vector<5x8x50xf32> to vector<1x8x50xf32>
    %278 = vector.shape_cast %277 : vector<1x8x50xf32> to vector<8x50xf32>
    %279 = vector.broadcast %276 : f32 to vector<8x50xf32>
    %280 = arith.mulf %279, %278 : vector<8x50xf32>
    %281 = arith.addf %275, %280 : vector<8x50xf32>
    %c5_123 = arith.constant 5 : index
    %c2_124 = arith.constant 2 : index
    %282 = memref.load %arg13[%c5_123, %c2_124] : memref<8x5xf32, #tpu.memory_space<smem>>
    %283 = vector.extract_strided_slice %270 {offsets = [2, 0, 0], sizes = [1, 8, 50], strides = [1, 1, 1]} : vector<5x8x50xf32> to vector<1x8x50xf32>
    %284 = vector.shape_cast %283 : vector<1x8x50xf32> to vector<8x50xf32>
    %285 = vector.broadcast %282 : f32 to vector<8x50xf32>
    %286 = arith.mulf %285, %284 : vector<8x50xf32>
    %287 = arith.addf %281, %286 : vector<8x50xf32>
    %c5_125 = arith.constant 5 : index
    %c3_126 = arith.constant 3 : index
    %288 = memref.load %arg13[%c5_125, %c3_126] : memref<8x5xf32, #tpu.memory_space<smem>>
    %289 = vector.extract_strided_slice %270 {offsets = [3, 0, 0], sizes = [1, 8, 50], strides = [1, 1, 1]} : vector<5x8x50xf32> to vector<1x8x50xf32>
    %290 = vector.shape_cast %289 : vector<1x8x50xf32> to vector<8x50xf32>
    %291 = vector.broadcast %288 : f32 to vector<8x50xf32>
    %292 = arith.mulf %291, %290 : vector<8x50xf32>
    %293 = arith.addf %287, %292 : vector<8x50xf32>
    %c5_127 = arith.constant 5 : index
    %c4_128 = arith.constant 4 : index
    %294 = memref.load %arg13[%c5_127, %c4_128] : memref<8x5xf32, #tpu.memory_space<smem>>
    %295 = vector.extract_strided_slice %270 {offsets = [4, 0, 0], sizes = [1, 8, 50], strides = [1, 1, 1]} : vector<5x8x50xf32> to vector<1x8x50xf32>
    %296 = vector.shape_cast %295 : vector<1x8x50xf32> to vector<8x50xf32>
    %297 = vector.broadcast %294 : f32 to vector<8x50xf32>
    %298 = arith.mulf %297, %296 : vector<8x50xf32>
    %299 = arith.addf %293, %298 : vector<8x50xf32>
    %300 = arith.addf %224, %299 : vector<8x50xf32>
    %c0_129 = arith.constant 0 : index
    %c6 = arith.constant 6 : index
    %301 = memref.load %arg11[%c0_129, %c6] : memref<1x8xf32, #tpu.memory_space<smem>>
    %302 = vector.broadcast %301 : f32 to vector<5x8x50xf32>
    %303 = arith.mulf %302, %67 : vector<5x8x50xf32>
    %c0_130 = arith.constant 0 : index
    %c6_131 = arith.constant 6 : index
    %304 = memref.load %arg12[%c0_130, %c6_131] : memref<1x8xf32, #tpu.memory_space<smem>>
    %305 = vector.broadcast %304 : f32 to vector<5x8x50xf32>
    %306 = arith.addf %303, %305 : vector<5x8x50xf32>
    %cst_132 = arith.constant 0.000000e+00 : f32
    %307 = vector.broadcast %cst_132 : f32 to vector<5x8x50xf32>
    %308 = arith.maximumf %306, %307 : vector<5x8x50xf32>
    %c6_133 = arith.constant 6 : index
    %c0_134 = arith.constant 0 : index
    %309 = memref.load %arg13[%c6_133, %c0_134] : memref<8x5xf32, #tpu.memory_space<smem>>
    %310 = vector.extract_strided_slice %308 {offsets = [0, 0, 0], sizes = [1, 8, 50], strides = [1, 1, 1]} : vector<5x8x50xf32> to vector<1x8x50xf32>
    %311 = vector.shape_cast %310 : vector<1x8x50xf32> to vector<8x50xf32>
    %312 = vector.broadcast %309 : f32 to vector<8x50xf32>
    %313 = arith.mulf %312, %311 : vector<8x50xf32>
    %c6_135 = arith.constant 6 : index
    %c1_136 = arith.constant 1 : index
    %314 = memref.load %arg13[%c6_135, %c1_136] : memref<8x5xf32, #tpu.memory_space<smem>>
    %315 = vector.extract_strided_slice %308 {offsets = [1, 0, 0], sizes = [1, 8, 50], strides = [1, 1, 1]} : vector<5x8x50xf32> to vector<1x8x50xf32>
    %316 = vector.shape_cast %315 : vector<1x8x50xf32> to vector<8x50xf32>
    %317 = vector.broadcast %314 : f32 to vector<8x50xf32>
    %318 = arith.mulf %317, %316 : vector<8x50xf32>
    %319 = arith.addf %313, %318 : vector<8x50xf32>
    %c6_137 = arith.constant 6 : index
    %c2_138 = arith.constant 2 : index
    %320 = memref.load %arg13[%c6_137, %c2_138] : memref<8x5xf32, #tpu.memory_space<smem>>
    %321 = vector.extract_strided_slice %308 {offsets = [2, 0, 0], sizes = [1, 8, 50], strides = [1, 1, 1]} : vector<5x8x50xf32> to vector<1x8x50xf32>
    %322 = vector.shape_cast %321 : vector<1x8x50xf32> to vector<8x50xf32>
    %323 = vector.broadcast %320 : f32 to vector<8x50xf32>
    %324 = arith.mulf %323, %322 : vector<8x50xf32>
    %325 = arith.addf %319, %324 : vector<8x50xf32>
    %c6_139 = arith.constant 6 : index
    %c3_140 = arith.constant 3 : index
    %326 = memref.load %arg13[%c6_139, %c3_140] : memref<8x5xf32, #tpu.memory_space<smem>>
    %327 = vector.extract_strided_slice %308 {offsets = [3, 0, 0], sizes = [1, 8, 50], strides = [1, 1, 1]} : vector<5x8x50xf32> to vector<1x8x50xf32>
    %328 = vector.shape_cast %327 : vector<1x8x50xf32> to vector<8x50xf32>
    %329 = vector.broadcast %326 : f32 to vector<8x50xf32>
    %330 = arith.mulf %329, %328 : vector<8x50xf32>
    %331 = arith.addf %325, %330 : vector<8x50xf32>
    %c6_141 = arith.constant 6 : index
    %c4_142 = arith.constant 4 : index
    %332 = memref.load %arg13[%c6_141, %c4_142] : memref<8x5xf32, #tpu.memory_space<smem>>
    %333 = vector.extract_strided_slice %308 {offsets = [4, 0, 0], sizes = [1, 8, 50], strides = [1, 1, 1]} : vector<5x8x50xf32> to vector<1x8x50xf32>
    %334 = vector.shape_cast %333 : vector<1x8x50xf32> to vector<8x50xf32>
    %335 = vector.broadcast %332 : f32 to vector<8x50xf32>
    %336 = arith.mulf %335, %334 : vector<8x50xf32>
    %337 = arith.addf %331, %336 : vector<8x50xf32>
    %338 = arith.addf %262, %337 : vector<8x50xf32>
    %c0_143 = arith.constant 0 : index
    %c7 = arith.constant 7 : index
    %339 = memref.load %arg11[%c0_143, %c7] : memref<1x8xf32, #tpu.memory_space<smem>>
    %340 = vector.broadcast %339 : f32 to vector<5x8x50xf32>
    %341 = arith.mulf %340, %67 : vector<5x8x50xf32>
    %c0_144 = arith.constant 0 : index
    %c7_145 = arith.constant 7 : index
    %342 = memref.load %arg12[%c0_144, %c7_145] : memref<1x8xf32, #tpu.memory_space<smem>>
    %343 = vector.broadcast %342 : f32 to vector<5x8x50xf32>
    %344 = arith.addf %341, %343 : vector<5x8x50xf32>
    %cst_146 = arith.constant 0.000000e+00 : f32
    %345 = vector.broadcast %cst_146 : f32 to vector<5x8x50xf32>
    %346 = arith.maximumf %344, %345 : vector<5x8x50xf32>
    %c7_147 = arith.constant 7 : index
    %c0_148 = arith.constant 0 : index
    %347 = memref.load %arg13[%c7_147, %c0_148] : memref<8x5xf32, #tpu.memory_space<smem>>
    %348 = vector.extract_strided_slice %346 {offsets = [0, 0, 0], sizes = [1, 8, 50], strides = [1, 1, 1]} : vector<5x8x50xf32> to vector<1x8x50xf32>
    %349 = vector.shape_cast %348 : vector<1x8x50xf32> to vector<8x50xf32>
    %350 = vector.broadcast %347 : f32 to vector<8x50xf32>
    %351 = arith.mulf %350, %349 : vector<8x50xf32>
    %c7_149 = arith.constant 7 : index
    %c1_150 = arith.constant 1 : index
    %352 = memref.load %arg13[%c7_149, %c1_150] : memref<8x5xf32, #tpu.memory_space<smem>>
    %353 = vector.extract_strided_slice %346 {offsets = [1, 0, 0], sizes = [1, 8, 50], strides = [1, 1, 1]} : vector<5x8x50xf32> to vector<1x8x50xf32>
    %354 = vector.shape_cast %353 : vector<1x8x50xf32> to vector<8x50xf32>
    %355 = vector.broadcast %352 : f32 to vector<8x50xf32>
    %356 = arith.mulf %355, %354 : vector<8x50xf32>
    %357 = arith.addf %351, %356 : vector<8x50xf32>
    %c7_151 = arith.constant 7 : index
    %c2_152 = arith.constant 2 : index
    %358 = memref.load %arg13[%c7_151, %c2_152] : memref<8x5xf32, #tpu.memory_space<smem>>
    %359 = vector.extract_strided_slice %346 {offsets = [2, 0, 0], sizes = [1, 8, 50], strides = [1, 1, 1]} : vector<5x8x50xf32> to vector<1x8x50xf32>
    %360 = vector.shape_cast %359 : vector<1x8x50xf32> to vector<8x50xf32>
    %361 = vector.broadcast %358 : f32 to vector<8x50xf32>
    %362 = arith.mulf %361, %360 : vector<8x50xf32>
    %363 = arith.addf %357, %362 : vector<8x50xf32>
    %c7_153 = arith.constant 7 : index
    %c3_154 = arith.constant 3 : index
    %364 = memref.load %arg13[%c7_153, %c3_154] : memref<8x5xf32, #tpu.memory_space<smem>>
    %365 = vector.extract_strided_slice %346 {offsets = [3, 0, 0], sizes = [1, 8, 50], strides = [1, 1, 1]} : vector<5x8x50xf32> to vector<1x8x50xf32>
    %366 = vector.shape_cast %365 : vector<1x8x50xf32> to vector<8x50xf32>
    %367 = vector.broadcast %364 : f32 to vector<8x50xf32>
    %368 = arith.mulf %367, %366 : vector<8x50xf32>
    %369 = arith.addf %363, %368 : vector<8x50xf32>
    %c7_155 = arith.constant 7 : index
    %c4_156 = arith.constant 4 : index
    %370 = memref.load %arg13[%c7_155, %c4_156] : memref<8x5xf32, #tpu.memory_space<smem>>
    %371 = vector.extract_strided_slice %346 {offsets = [4, 0, 0], sizes = [1, 8, 50], strides = [1, 1, 1]} : vector<5x8x50xf32> to vector<1x8x50xf32>
    %372 = vector.shape_cast %371 : vector<1x8x50xf32> to vector<8x50xf32>
    %373 = vector.broadcast %370 : f32 to vector<8x50xf32>
    %374 = arith.mulf %373, %372 : vector<8x50xf32>
    %375 = arith.addf %369, %374 : vector<8x50xf32>
    %376 = arith.addf %300, %375 : vector<8x50xf32>
    %377 = arith.addf %338, %376 : vector<8x50xf32>
    %378 = arith.negf %377 : vector<8x50xf32>
    %379 = math.exp %378 : vector<8x50xf32>
    %cst_157 = arith.constant 1.000000e+00 : f32
    %380 = vector.broadcast %cst_157 : f32 to vector<8x50xf32>
    %381 = arith.addf %380, %379 : vector<8x50xf32>
    %382 = arith.divf %380, %381 : vector<8x50xf32>
    %383 = vector.shape_cast %382 : vector<8x50xf32> to vector<2x4x50xf32>
    %384 = vector.shape_cast %383 : vector<2x4x50xf32> to vector<2x1x4x1x50xf32>
    %385 = vector.broadcast %384 : vector<2x1x4x1x50xf32> to vector<2x4x4x8x50xf32>
    %386 = arith.mulf %30, %385 : vector<2x4x4x8x50xf32>
    %c0_158 = arith.constant 0 : index
    %c0_159 = arith.constant 0 : index
    %c0_160 = arith.constant 0 : index
    %c0_161 = arith.constant 0 : index
    %c0_162 = arith.constant 0 : index
    %387 = vector.load %arg15[%c0_158, %c0_159, %c0_160, %c0_161, %c0_162] : memref<2x4x4x8x50xf32, #tpu.memory_space<vmem>>, vector<2x4x4x8x50xf32>
    tpu.vector_store %arg15[%c0_158, %c0_159, %c0_160, %c0_161, %c0_162], %386 {strides = array<i32>} : memref<2x4x4x8x50xf32, #tpu.memory_space<vmem>>, vector<2x4x4x8x50xf32>,
    return
  }
  func.func @transform_0(%arg0: i32) -> (i32, i32, i32, i32, i32) {
    %c0_i32 = arith.constant 0 : i32
    %c0_i32_0 = arith.constant 0 : i32
    %c0_i32_1 = arith.constant 0 : i32
    %c0_i32_2 = arith.constant 0 : i32
    %c0_i32_3 = arith.constant 0 : i32
    return %arg0, %c0_i32, %c0_i32_0, %c0_i32_1, %c0_i32_2 : i32, i32, i32, i32, i32
  }
  func.func @transform_1(%arg0: i32) -> (i32, i32) {
    %c0_i32 = arith.constant 0 : i32
    %c0_i32_0 = arith.constant 0 : i32
    %c0_i32_1 = arith.constant 0 : i32
    return %c0_i32, %c0_i32_0 : i32, i32
  }
  func.func @transform_2(%arg0: i32) -> (i32, i32) {
    %c0_i32 = arith.constant 0 : i32
    %c0_i32_0 = arith.constant 0 : i32
    %c0_i32_1 = arith.constant 0 : i32
    return %c0_i32, %c0_i32_0 : i32, i32
  }
  func.func @transform_3(%arg0: i32) -> (i32, i32) {
    %c0_i32 = arith.constant 0 : i32
    %c0_i32_0 = arith.constant 0 : i32
    %c0_i32_1 = arith.constant 0 : i32
    return %c0_i32, %c0_i32_0 : i32, i32
  }
  func.func @transform_4(%arg0: i32) -> (i32, i32) {
    %c0_i32 = arith.constant 0 : i32
    %c0_i32_0 = arith.constant 0 : i32
    %c0_i32_1 = arith.constant 0 : i32
    return %c0_i32, %c0_i32_0 : i32, i32
  }
  func.func @transform_5(%arg0: i32) -> (i32, i32) {
    %c0_i32 = arith.constant 0 : i32
    %c0_i32_0 = arith.constant 0 : i32
    %c0_i32_1 = arith.constant 0 : i32
    return %c0_i32, %c0_i32_0 : i32, i32
  }
  func.func @transform_6(%arg0: i32) -> (i32, i32) {
    %c0_i32 = arith.constant 0 : i32
    %c0_i32_0 = arith.constant 0 : i32
    %c0_i32_1 = arith.constant 0 : i32
    return %c0_i32, %c0_i32_0 : i32, i32
  }
  func.func @transform_7(%arg0: i32) -> (i32, i32) {
    %c0_i32 = arith.constant 0 : i32
    %c0_i32_0 = arith.constant 0 : i32
    %c0_i32_1 = arith.constant 0 : i32
    return %c0_i32, %c0_i32_0 : i32, i32
  }
  func.func @transform_8(%arg0: i32) -> (i32, i32) {
    %c0_i32 = arith.constant 0 : i32
    %c0_i32_0 = arith.constant 0 : i32
    %c0_i32_1 = arith.constant 0 : i32
    return %c0_i32, %c0_i32_0 : i32, i32
  }
  func.func @transform_9(%arg0: i32) -> (i32, i32) {
    %c0_i32 = arith.constant 0 : i32
    %c0_i32_0 = arith.constant 0 : i32
    %c0_i32_1 = arith.constant 0 : i32
    return %c0_i32, %c0_i32_0 : i32, i32
  }
  func.func @transform_10(%arg0: i32) -> (i32, i32) {
    %c0_i32 = arith.constant 0 : i32
    %c0_i32_0 = arith.constant 0 : i32
    %c0_i32_1 = arith.constant 0 : i32
    return %c0_i32, %c0_i32_0 : i32, i32
  }
  func.func @transform_11(%arg0: i32) -> (i32, i32) {
    %c0_i32 = arith.constant 0 : i32
    %c0_i32_0 = arith.constant 0 : i32
    %c0_i32_1 = arith.constant 0 : i32
    return %c0_i32, %c0_i32_0 : i32, i32
  }
  func.func @transform_12(%arg0: i32) -> (i32, i32) {
    %c0_i32 = arith.constant 0 : i32
    %c0_i32_0 = arith.constant 0 : i32
    %c0_i32_1 = arith.constant 0 : i32
    return %c0_i32, %c0_i32_0 : i32, i32
  }
  func.func @transform_13(%arg0: i32) -> (i32, i32) {
    %c0_i32 = arith.constant 0 : i32
    %c0_i32_0 = arith.constant 0 : i32
    %c0_i32_1 = arith.constant 0 : i32
    return %c0_i32, %c0_i32_0 : i32, i32
  }
  func.func @transform_14(%arg0: i32) -> (i32, i32, i32, i32, i32) {
    %c0_i32 = arith.constant 0 : i32
    %c0_i32_0 = arith.constant 0 : i32
    %c0_i32_1 = arith.constant 0 : i32
    %c0_i32_2 = arith.constant 0 : i32
    %c0_i32_3 = arith.constant 0 : i32
    return %arg0, %c0_i32, %c0_i32_0, %c0_i32_1, %c0_i32_2 : i32, i32, i32, i32, i32
  }
}

</mosaic_0001>

<bundles_post_ra>
// kernel: tpu_custom_call.1
= control target key start
LH: loop header
LB: loop body
LE: loop exit
PB: predicated region body
PF: predicated region fallthrough
CT: control target
= control target key end

     0   :  { %20 = vsyncpa [#allocation4], 0  ;;  %s3198_s0 = inlined_call_operand.hbm [shape: f32[2,4,4,8,50], index: 0, kind: input, shape index: {}]   ;;  %s3199_s1 = inlined_call_operand.hbm [shape: f32[50,150], index: 1, kind: input, shape index: {}]   ;;  %s3200_s2 = inlined_call_operand.vmem [shape: f32[8,8], index: 2, kind: input, shape index: {}]   ;;  %s3201_s3 = inlined_call_operand.vmem [shape: f32[1,8], index: 3, kind: input, shape index: {}]   ;;  %s3202_s4 = inlined_call_operand.vmem [shape: f32[8,8], index: 4, kind: input, shape index: {}]   ;;  %s3203_s5 = inlined_call_operand.vmem [shape: f32[1,8], index: 5, kind: input, shape index: {}]   ;;  %s3204_s6 = inlined_call_operand.vmem [shape: f32[50,10], index: 6, kind: input, shape index: {}]   ;;  %s3205_s7 = inlined_call_operand.vmem [shape: f32[1,10], index: 7, kind: input, shape index: {}]   ;;  %s3206_s8 = inlined_call_operand.vmem [shape: f32[10,50], index: 8, kind: input, shape index: {}]   ;;  %s3207_s9 = inlined_call_operand.vmem [shape: f32[1,50], index: 9, kind: input, shape index: {}]   ;;  %s3208_s10 = inlined_call_operand.vmem [shape: f32[1,8], index: 10, kind: input, shape index: {}]   ;;  %s3209_s11 = inlined_call_operand.vmem [shape: f32[1,8], index: 11, kind: input, shape index: {}]   ;;  %s3210_s12 = inlined_call_operand.vmem [shape: f32[8,5], index: 12, kind: input, shape index: {}]   ;;  %s3211_s13 = inlined_call_operand.<no memory space> [shape: f32[1,1], index: 13, kind: input, shape index: {}]   ;;  %s3212_s14 = inlined_call_operand.hbm [shape: f32[2,4,4,8,50], index: 14, kind: output, shape index: {}]  }
   0x1   :  { %21 = vsyncpa [#allocation8], 0 }
   0x2   :  { %22 = vsyncpa [#allocation6], 0 }
   0x3   :  { %23 = vsyncpa [#allocation11], 0  ;;  %s81_s15 = sshll.u32 %s3209_s11, 4  ;;  %s82_s15 = int_to_ptr.vmem [resolvable:$true] %s81_s15 }
   0x4   :  { %24 = vsyncpa [#allocation5], 0  ;;  %s1918_s16 = scalar_lea.vmem %s82_s15, 16  ;;  %p1923_p1 = scmp.lt.s32.totalorder %s82_s15, %s82_s15 }
   0x5   :  { %p1919_p0 = scmp.ne.s32.totalorder %s82_s15, %s1918_s16  ;;  %p1924_p2 = scmp.lt.s32.totalorder %s1918_s16, %s1918_s16 }
   0x7   :  { %p1925_p3 = por %p1924_p2, %p1923_p1 }
   0x9   :  { %p1926_p4 = pnand %p1925_p3, %p1919_p0 }
   0xb   :  { %1929 = shalt.err (!%p1926_p4)
}
   0xc   :  { %s2030_s17 = smov [#allocation10]   ;;  %s2031_s18 = smov [#allocation3]  }
   0xd   :  { %84 = dma.vmem_to_smem %s82_s15, 16, %s2030_s17, [#allocation11]  }
   0xe   :  { %s30_s19 = sshll.u32 %s2031_s18, 4  ;;  %s1930_s22 = scalar_lea.hbm %s3198_s0, 4096  ;;  %s31_s19 = int_to_ptr.vmem [resolvable:$true] %s30_s19 }
   0xf   :  { %p1931_p5 = scmp.ne.s32.totalorder %s3198_s0, %s1930_s22  ;;  %p1934_p6 = scmp.lt.u32.totalorder %s1930_s22, %s3198_s0 }
  0x11   :  { %p1936_p7 = pnand %p1934_p6, %p1931_p5 }
  0x13   :  { %1939 = shalt.err (!%p1936_p7)
}
  0x14   :  { %s1940_s26 = scalar_lea.vmem %s31_s19, 4096  ;;  %p1945_p9 = scmp.lt.s32.totalorder %s31_s19, %s31_s19 }
  0x15   :  { %p1941_p8 = scmp.ne.s32.totalorder %s31_s19, %s1940_s26  ;;  %p1946_p10 = scmp.lt.s32.totalorder %s1940_s26, %s1940_s26 }
  0x17   :  { %p1947_p11 = por %p1946_p10, %p1945_p9 }
  0x19   :  { %p1948_p12 = pnand %p1947_p11, %p1941_p8 }
  0x1b   :  { %1951 = shalt.err (!%p1948_p12)
}
  0x1c   :  { %s3219_s27 = smov 128   ;;  %s2033_s28 = smov 8  }
  0x1d   :  { %36 = dma.hbm_to_vmem [thread:$0]  %s3198_s0, 4096, %s31_s19, [#allocation4], %s3219_s27, %s3219_s27, %s2033_s28  }
  0x1e   :  { %s2034_s15 = smov [#allocation7]   ;;  %s71_s20 = sshll.u32 %s3208_s10, 4  ;;  %s72_s20 = int_to_ptr.vmem [resolvable:$true] %s71_s20 }
  0x1f   :  { %s42_s16 = sshll.u32 %s2034_s15, 4  ;;  %s1952_s23 = scalar_lea.hbm %s3199_s1, 1792  ;;  %s43_s16 = int_to_ptr.vmem [resolvable:$true] %s42_s16 }
  0x20   :  { %p1953_p13 = scmp.ne.s32.totalorder %s3199_s1, %s1952_s23  ;;  %p1956_p0 = scmp.lt.u32.totalorder %s1952_s23, %s3199_s1 }
  0x22   :  { %p1958_p1 = pnand %p1956_p0, %p1953_p13 }
  0x24   :  { %1961 = shalt.err (!%p1958_p1)
}
  0x25   :  { %s1962_s0 = scalar_lea.vmem %s43_s16, 1792  ;;  %p1967_p3 = scmp.lt.s32.totalorder %s43_s16, %s43_s16 }
  0x26   :  { %p1963_p2 = scmp.ne.s32.totalorder %s43_s16, %s1962_s0  ;;  %p1968_p4 = scmp.lt.s32.totalorder %s1962_s0, %s1962_s0 }
  0x28   :  { %p1969_p5 = por %p1968_p4, %p1967_p3 }
  0x2a   :  { %p1970_p6 = pnand %p1969_p5, %p1963_p2 }
  0x2c   :  { %1973 = shalt.err (!%p1970_p6)
}
  0x2d   :  { %s2035_s10 = smov 256   ;;  %s2036_s19 = smov 16  }
  0x2e   :  { %48 = dma.hbm_to_vmem [thread:$0]  %s3199_s1, 1792, %s43_s16, [#allocation8], %s2035_s10, %s2035_s10, %s2036_s19  }
  0x2f   :  { %s1974_s15 = scalar_lea.vmem %s72_s20, 16  ;;  %p1979_p8 = scmp.lt.s32.totalorder %s72_s20, %s72_s20 }
  0x30   :  { %p1975_p7 = scmp.ne.s32.totalorder %s72_s20, %s1974_s15  ;;  %p1980_p9 = scmp.lt.s32.totalorder %s1974_s15, %s1974_s15 }
  0x32   :  { %p1981_p10 = por %p1980_p9, %p1979_p8 }
  0x34   :  { %p1982_p11 = pnand %p1981_p10, %p1975_p7 }
  0x36   :  { %1985 = shalt.err (!%p1982_p11)
}
  0x37   :  { %s2037_s17 = smov [#allocation9]   ;;  %s91_s22 = sshll.u32 %s3210_s12, 4  ;;  %s92_s22 = int_to_ptr.vmem [resolvable:$true] %s91_s22 }
  0x38   :  { %74 = dma.vmem_to_smem %s72_s20, 16, %s2037_s17, [#allocation6]  }
  0x39   :  { %s1986_s23 = scalar_lea.vmem %s92_s22, 128  ;;  %p1991_p13 = scmp.lt.s32.totalorder %s92_s22, %s92_s22 }
  0x3a   :  { %p1987_p12 = scmp.ne.s32.totalorder %s92_s22, %s1986_s23  ;;  %p1992_p0 = scmp.lt.s32.totalorder %s1986_s23, %s1986_s23 }
  0x3c   :  { %p1993_p1 = por %p1992_p0, %p1991_p13 }
  0x3e   :  { %p1994_p2 = pnand %p1993_p1, %p1987_p12 }
  0x40   :  { %1997 = shalt.err (!%p1994_p2)
}
  0x41   :  { %s2038_s1 = smov [#allocation12]  }
  0x42   :  { %94 = dma.vmem_to_smem %s92_s22, 128, %s2038_s1, [#allocation11]  }
  0x43   :  { %2020 = dma.done.wait [#allocation4], 4096  }
  0x44   :  { %2021 = vsyncadd [#allocation4], 4294963200 }
  0x45   :  { %2022 = dma.done.wait [#allocation8], 1792  }
  0x46   :  { %2023 = vsyncadd [#allocation8], 4294965504 }
  0x47   :  { %2024 = dma.done.wait [#allocation6], 16  }
  0x48   :  { %2025 = vsyncadd [#allocation6], 4294967280 }
  0x49   :  { %2026 = dma.done.wait [#allocation11], 144  }
  0x4a   :  { %2027 = vsyncadd [#allocation11], 4294967152 }
  0x4b   :  { %112 = sfence }
  0x4c   :  { %v2156_v0 = vld [vmem:[#allocation3 + $0x10] sm:$0xff]  ;;  %vm145_vm0 = vcmask 408576   ;;  %v2170_v7 = vld [vmem:[#allocation3] sm:$0xff]  ;;  %v2184_v15 = vld [vmem:[#allocation3 + $0x18] sm:$0xff]  ;;  %vm356_vm1 = vcmask 1041409   ;;  %vm358_vm2 = vcmask 1042434  }
  0x4d   :  { %v2158_v1 = vld [vmem:[#allocation3 + $0x30] sm:$0xff]  ;;  %v160_v4 = vsel %vm145_vm0, %v2156_v0, 0.0  ;;  %v2172_v8 = vld [vmem:[#allocation3 + $0x20] sm:$0xff]  ;;  %v146_v13 = vsel %vm145_vm0, %v2170_v7, 0.0  ;;  %v2190_v19 = vld [vmem:[#allocation3 + $0x38] sm:$0xff]  ;;  %v167_v22 = vsel %vm145_vm0, %v2184_v15, 0.0 }
  0x4e   :  { %v2160_v2 = vld [vmem:[#allocation3 + $0x50] sm:$0xff]  ;;  %v161_v5 = vsel %vm145_vm0, %v2158_v1, 0.0  ;;  %v2176_v11 = vld [vmem:[#allocation3 + $0x40] sm:$0xff]  ;;  %v147_v14 = vsel %vm145_vm0, %v2172_v8, 0.0  ;;  %v2192_v20 = vld [vmem:[#allocation3 + $0x58] sm:$0xff]  ;;  %v168_v24 = vsel %vm145_vm0, %v2190_v19, 0.0 }
  0x4f   :  { %v2162_v3 = vld [vmem:[#allocation3 + $0x70] sm:$0xff]  ;;  %v163_v6 = vsel %vm145_vm0, %v2160_v2, 0.0  ;;  %v162_v9 = vadd.f32 %v161_v5, %v160_v4  ;;  %v2178_v12 = vld [vmem:[#allocation3 + $0x60] sm:$0xff]  ;;  %v148_v16 = vadd.f32 %v147_v14, %v146_v13  ;;  %v149_v17 = vsel %vm145_vm0, %v2176_v11, 0.0  ;;  %v2194_v21 = vld [vmem:[#allocation3 + $0x78] sm:$0xff]  ;;  %s2041_s11 = smov 28  }
  0x50   :  { %v165_v10 = vsel %vm145_vm0, %v2162_v3, 0.0  ;;  %v151_v18 = vsel %vm145_vm0, %v2178_v12, 0.0  ;;  %v170_v25 = vsel %vm145_vm0, %v2192_v20, 0.0  ;;  %v172_v26 = vsel %vm145_vm0, %v2194_v21, 0.0  ;;  %v2204_v27 = vld [vmem:[#allocation3 + $0x8] sm:$0xff]  ;;  %v2220_v39 = vld [vmem:[#allocation3 + $0x80] sm:$0xff] }
  0x51   :  { %v164_v23 = vadd.f32 %v163_v6, %v162_v9  ;;  %v2206_v28 = vld [vmem:[#allocation3 + $0x28] sm:$0xff]  ;;  %v150_v30 = vadd.f32 %v149_v17, %v148_v16  ;;  %v169_v31 = vadd.f32 %v168_v24, %v167_v22  ;;  %v153_v33 = vsel %vm145_vm0, %v2204_v27, 0.0  ;;  %v2226_v44 = vld [vmem:[#allocation3 + $0xa0] sm:$0xff]  ;;  %v2262_v16 = vld [vmem:[#allocation3 + $0x90] sm:$0xff]  ;;  %s2042_s24 = smov 78   ;;  %s1766_s25 = sld [smem:[#allocation9 + $0x1]] }
  0x52   :  { %v2208_v29 = vld [vmem:[#allocation3 + $0x48] sm:$0xff]  ;;  %v154_v34 = vsel %vm145_vm0, %v2206_v28, 0.0  ;;  %v234_v42 = vsel %vm145_vm0, %v2170_v7, -inf  ;;  %v235_v43 = vsel %vm145_vm0, %v2172_v8, -inf  ;;  %v2228_v45 = vld [vmem:[#allocation3 + $0xc0] sm:$0xff]  ;;  %v237_v49 = vsel %vm145_vm0, %v2176_v11, -inf }
  0x53   :  { %v2210_v32 = vld [vmem:[#allocation3 + $0x68] sm:$0xff]  ;;  %v166_v35 = vadd.f32 %v165_v10, %v164_v23  ;;  %v155_v36 = vadd.f32 %v154_v34, %v153_v33  ;;  %v156_v37 = vsel %vm145_vm0, %v2208_v29, 0.0  ;;  %v152_v40 = vadd.f32 %v151_v18, %v150_v30  ;;  %v2233_v50 = vld [vmem:[#allocation3 + $0xe0] sm:$0xff]  ;;  %v2266_v23 = vld [vmem:[#allocation3 + $0xb0] sm:$0xff]  ;;  %s2740_s26 = sld [smem:[#allocation9 + $0x2]]  ;;  %s1781_s10 = sld [smem:[#allocation10 + $0x3]] }
  0x54   :  { %v158_v38 = vsel %vm145_vm0, %v2210_v32, 0.0  ;;  %v171_v41 = vadd.f32 %v170_v25, %v169_v31  ;;  %v236_v48 = vmax.f32 %v234_v42, %v235_v43  ;;  %v2235_v51 = vld [vmem:[#allocation3 + $0x88] sm:$0xff]  ;;  %v239_v54 = vsel %vm145_vm0, %v2178_v12, -inf  ;;  %v2268_v24 = vld [vmem:[#allocation3 + $0xd0] sm:$0xff]  ;;  %s1774_s0 = sld [smem:[#allocation10 + $0x2]]  ;;  %s1787_s19 = sld [smem:[#allocation9 + $0x4]] }
  0x55   :  { %v208_v46 = vsel %vm145_vm0, %v166_v35, 0.0  ;;  %v157_v47 = vadd.f32 %v156_v37, %v155_v36  ;;  %v202_v52 = vsel %vm145_vm0, %v152_v40, 0.0  ;;  %v174_v55 = vsel %vm145_vm0, %v2220_v39, 0.0  ;;  %v2242_v56 = vld [vmem:[#allocation3 + $0xa8] sm:$0xff]  ;;  %v2277_v36 = vld [vmem:[#allocation3 + $0xf0] sm:$0xff]  ;;  %s1788_s29 = sld [smem:[#allocation10 + $0x4]] }
  0x56   :  { %209 = vadd.xlane.f32.xlu1 %v208_v46  ;;  %v173_v53 = vadd.f32 %v172_v26, %v171_v41  ;;  %v2244_v57 = vld [vmem:[#allocation3 + $0xc8] sm:$0xff]  ;;  %203 = vadd.xlane.f32.xlu0 %v202_v52  ;;  %v238_v59 = vmax.f32 %v236_v48, %v237_v49  ;;  %v175_v60 = vsel %vm145_vm0, %v2226_v44, 0.0  ;;  %v177_v61 = vsel %vm145_vm0, %v2228_v45, 0.0  ;;  %v2292_v52 = vld [vmem:[#allocation3 + $0xb8] sm:$0xff]  ;;  %s1794_s30 = sld [smem:[#allocation9 + $0x5]]  ;;  %s1801_s17 = sld [smem:[#allocation9 + $0x6]] }
  0x57   :  { %v159_v58 = vadd.f32 %v158_v38, %v157_v47  ;;  %v176_v63 = vadd.f32 %v175_v60, %v174_v55  ;;  %v179_v4 = vsel %vm145_vm0, %v2233_v50, 0.0  ;;  %v2253_v5 = vld [vmem:[#allocation3 + $0xe8] sm:$0xff]  ;;  %v181_v6 = vsel %vm145_vm0, %v2235_v51, 0.0  ;;  %v2281_v38 = vld [vmem:[#allocation3 + $0x98] sm:$0xff]  ;;  %s1795_s15 = sld [smem:[#allocation10 + $0x5]]  ;;  %s1802_s18 = sld [smem:[#allocation10 + $0x6]] }
  0x58   :  { %v211_v62 = vsel %vm145_vm0, %v173_v53, 0.0  ;;  %v240_v10 = vmax.f32 %v238_v59, %v239_v54  ;;  %v182_v13 = vsel %vm145_vm0, %v2242_v56, 0.0  ;;  %v184_v14 = vsel %vm145_vm0, %v2244_v57, 0.0  ;;  %v2294_v53 = vld [vmem:[#allocation3 + $0xd8] sm:$0xff]  ;;  %s1808_s21 = sld [smem:[#allocation9 + $0x7]]  ;;  %s2744_s23 = sld [smem:[#allocation12 + $0x3]] }
  0x59   :  { %v205_v9 = vsel %vm145_vm0, %v159_v58, 0.0  ;;  %v178_v17 = vadd.f32 %v177_v61, %v176_v63  ;;  %v183_v18 = vadd.f32 %v182_v13, %v181_v6  ;;  %v241_v22 = vsel %vm145_vm0, %v2204_v27, -inf  ;;  %s1809_s22 = sld [smem:[#allocation10 + $0x7]]  ;;  %s2748_s1 = sld [smem:[#allocation12 + $0x83]] }
  0x5a   :  { %212 = vadd.xlane.f32.xlu1 %v211_v62  ;;  %206 = vadd.xlane.f32.xlu0 %v205_v9  ;;  %v290_v25 = vsel %vm145_vm0, %v240_v10, -inf  ;;  %v186_v26 = vsel %vm145_vm0, %v2253_v5, 0.0  ;;  %v242_v30 = vsel %vm145_vm0, %v2206_v28, -inf  ;;  %v244_v31 = vsel %vm145_vm0, %v2208_v29, -inf  ;;  %s2750_s12 = sld [smem:[#allocation12 + $0x84]]  ;;  %s2752_s16 = sld [smem:[#allocation12 + $0x103]] }
  0x5b   :  { %v180_v33 = vadd.f32 %v179_v4, %v178_v17  ;;  %v185_v34 = vadd.f32 %v184_v14, %v183_v18  ;;  %v243_v35 = vmax.f32 %v241_v22, %v242_v30  ;;  %v188_v37 = vsel %vm145_vm0, %v2262_v16, 0.0  ;;  %v2305_v4 = vld [vmem:[#allocation3 + $0xf8] sm:$0xff]  ;;  %s2756_s20 = sld [smem:[#allocation12 + $0x183]]  ;;  %s2770_s27 = sld [smem:[#allocation12 + $0x284]] }
  0x5c   :  { %v246_v40 = vsel %vm145_vm0, %v2210_v32, -inf  ;;  %v189_v41 = vsel %vm145_vm0, %v2266_v23, 0.0  ;;  %v191_v42 = vsel %vm145_vm0, %v2268_v24, 0.0  ;;  %v248_v43 = vsel %vm145_vm0, %v2156_v0, -inf }
  0x5d   :  { %v214_v46 = vsel %vm145_vm0, %v180_v33, 0.0  ;;  %v187_v47 = vadd.f32 %v186_v26, %v185_v34  ;;  %v245_v48 = vmax.f32 %v243_v35, %v244_v31  ;;  %v190_v49 = vadd.f32 %v189_v41, %v188_v37 }
  0x5e   :  { %291 = vmax.xlane.f32.xlu1 %v290_v25  ;;  %215 = vadd.xlane.f32.xlu0 %v214_v46  ;;  %v193_v54 = vsel %vm145_vm0, %v2277_v36, 0.0  ;;  %v249_v55 = vsel %vm145_vm0, %v2158_v1, -inf  ;;  %v251_v58 = vsel %vm145_vm0, %v2160_v2, -inf  ;;  %v195_v59 = vsel %vm145_vm0, %v2281_v38, 0.0 }
  0x5f   :  { %v217_v60 = vsel %vm145_vm0, %v187_v47, 0.0  ;;  %v247_v61 = vmax.f32 %v245_v48, %v246_v40  ;;  %v192_v62 = vadd.f32 %v191_v42, %v190_v49  ;;  %v250_v63 = vmax.f32 %v248_v43, %v249_v55 }
  0x60   :  { %v253_v6 = vsel %vm145_vm0, %v2162_v3, -inf  ;;  %v196_v9 = vsel %vm145_vm0, %v2292_v52, 0.0  ;;  %v198_v10 = vsel %vm145_vm0, %v2294_v53, 0.0  ;;  %v255_v13 = vsel %vm145_vm0, %v2184_v15, -inf }
  0x61   :  { %v293_v14 = vsel %vm145_vm0, %v247_v61, -inf  ;;  %v194_v17 = vadd.f32 %v193_v54, %v192_v62  ;;  %v252_v18 = vmax.f32 %v250_v63, %v251_v58  ;;  %v197_v22 = vadd.f32 %v196_v9, %v195_v59 }
  0x62   :  { %218 = vadd.xlane.f32.xlu1 %v217_v60  ;;  %294 = vmax.xlane.f32.xlu0 %v293_v14  ;;  %v200_v25 = vsel %vm145_vm0, %v2305_v4, 0.0  ;;  %v256_v26 = vsel %vm145_vm0, %v2190_v19, -inf  ;;  %v258_v30 = vsel %vm145_vm0, %v2192_v20, -inf  ;;  %v262_v31 = vsel %vm145_vm0, %v2220_v39, -inf }
  0x63   :  { %v220_v33 = vsel %vm145_vm0, %v194_v17, 0.0  ;;  %v254_v34 = vmax.f32 %v252_v18, %v253_v6  ;;  %v199_v35 = vadd.f32 %v198_v10, %v197_v22  ;;  %v257_v37 = vmax.f32 %v255_v13, %v256_v26 }
  0x64   :  { %v260_v40 = vsel %vm145_vm0, %v2194_v21, -inf  ;;  %v263_v41 = vsel %vm145_vm0, %v2226_v44, -inf  ;;  %v265_v42 = vsel %vm145_vm0, %v2228_v45, -inf  ;;  %v269_v43 = vsel %vm145_vm0, %v2235_v51, -inf }
  0x65   :  { %v296_v46 = vsel %vm145_vm0, %v254_v34, -inf  ;;  %v201_v47 = vadd.f32 %v200_v25, %v199_v35  ;;  %v259_v48 = vmax.f32 %v257_v37, %v258_v30  ;;  %v264_v49 = vmax.f32 %v262_v31, %v263_v41 }
  0x66   :  { %221 = vadd.xlane.f32.xlu1 %v220_v33  ;;  %297 = vmax.xlane.f32.xlu0 %v296_v46  ;;  %v267_v54 = vsel %vm145_vm0, %v2233_v50, -inf  ;;  %v270_v55 = vsel %vm145_vm0, %v2242_v56, -inf  ;;  %v272_v58 = vsel %vm145_vm0, %v2244_v57, -inf  ;;  %v276_v59 = vsel %vm145_vm0, %v2262_v16, -inf }
  0x67   :  { %v223_v60 = vsel %vm145_vm0, %v201_v47, 0.0  ;;  %v261_v61 = vmax.f32 %v259_v48, %v260_v40  ;;  %v266_v62 = vmax.f32 %v264_v49, %v265_v42  ;;  %v271_v63 = vmax.f32 %v269_v43, %v270_v55  ;;  %v417_v48 = vld [vmem:[%s3200_s2] sm:$0xff]  ;;  %s2754_s2 = sld [smem:[#allocation12 + $0x104]] }
  0x68   :  { %v274_v6 = vsel %vm145_vm0, %v2253_v5, -inf  ;;  %v277_v9 = vsel %vm145_vm0, %v2266_v23, -inf  ;;  %v279_v10 = vsel %vm145_vm0, %v2268_v24, -inf  ;;  %v283_v13 = vsel %vm145_vm0, %v2281_v38, -inf  ;;  %1835 = vmatprep.subr.mxu0 %v417_v48 }
  0x69   :  { %v299_v14 = vsel %vm145_vm0, %v261_v61, -inf  ;;  %v268_v17 = vmax.f32 %v266_v62, %v267_v54  ;;  %v273_v18 = vmax.f32 %v271_v63, %v272_v58  ;;  %v278_v22 = vmax.f32 %v276_v59, %v277_v9  ;;  %1836 = vmatpush3.msra.mxu0 %v417_v48 }
  0x6a   :  { %224 = vadd.xlane.f32.xlu1 %v223_v60  ;;  %300 = vmax.xlane.f32.xlu0 %v299_v14  ;;  %v281_v25 = vsel %vm145_vm0, %v2277_v36, -inf  ;;  %v284_v26 = vsel %vm145_vm0, %v2292_v52, -inf  ;;  %v286_v30 = vsel %vm145_vm0, %v2294_v53, -inf  ;;  %v288_v37 = vsel %vm145_vm0, %v2305_v4, -inf }
  0x6b   :  { %v302_v31 = vsel %vm145_vm0, %v268_v17, -inf  ;;  %v275_v33 = vmax.f32 %v273_v18, %v274_v6  ;;  %v280_v34 = vmax.f32 %v278_v22, %v279_v10  ;;  %v285_v35 = vmax.f32 %v283_v13, %v284_v26 }
  0x6c   :  { %v322_v49 = vlaneseq  ;;  %vm360_vm3 = vcmask 1043459   ;;  %vm362_vm4 = vcmask 1044484   ;;  %vm364_vm5 = vcmask 1045509  }
  0x6d   :  { %v305_v40 = vsel %vm145_vm0, %v275_v33, -inf  ;;  %v282_v41 = vmax.f32 %v280_v34, %v281_v25  ;;  %v287_v42 = vmax.f32 %v285_v35, %v286_v30  ;;  %vm366_vm6 = vcmask 1046534  }
  0x6e   :  { %303 = vmax.xlane.f32.xlu0 %v302_v31  ;;  %306 = vmax.xlane.f32.xlu1 %v305_v40  ;;  %v323_v58 = vand.u32 127, %v322_v49  ;;  %v2367_v59 = vshrl.u32 %v322_v49, 7  ;;  %vm368_vm7 = vcmask 1047559   ;;  %vm425_vm8 = vcmask 64512  }
  0x6f   :  { %v308_v43 = vsel %vm145_vm0, %v282_v41, -inf  ;;  %v289_v46 = vmax.f32 %v287_v42, %v288_v37  ;;  %vm966_vm9 = vcmask 1041408   ;;  %vm2039_vm10 = vmmov 1  }
  0x70   :  { %3249 = vst [vmem:[#allocation19_spill] sm:$0xff] %v2367_v59  ;;  %v326_v63 = vsub.s32 %v323_v58, %v2367_v59  ;;  %vm1882_vm11 = vmpackc.low %vm966_vm9, %vm2039_vm10  ;;  %vm1056_vm12 = vcmask 80896   ;;  %vm1246_vm13 = vcmask 228352  }
  0x71   :  { %v311_v47 = vsel %vm145_vm0, %v289_v46, -inf }
  0x72   :  { %309 = vmax.xlane.f32.xlu0 %v308_v43  ;;  %312 = vmax.xlane.f32.xlu1 %v311_v47 }
  0xe3   :  { %v210_v54 = vpop.xlane.xlu1 %209  ;;  %v204_v55 = vpop.xlane.xlu0 %203 }
  0xe4   :  { %v226_v6 = vmul.f32 0.005, %v204_v55  ;;  %v228_v14 = vmul.f32 0.005, %v210_v54 }
  0xe6   :  { %v327_v17 = vrot.slane %v226_v6, %v326_v63  ;;  %v335_v30 = vrot.slane %v228_v14, %v326_v63 }
  0xe7   :  { %v213_v60 = vpop.xlane.xlu1 %212  ;;  %v207_v61 = vpop.xlane.xlu0 %206 }
  0xe8   :  { %v227_v62 = vmul.f32 0.005, %v207_v61  ;;  %v229_v18 = vmul.f32 0.005, %v213_v60 }
  0xea   :  { %v331_v10 = vrot.slane %v227_v62, %v326_v63  ;;  %v339_v33 = vrot.slane %v229_v18, %v326_v63 }
  0xeb   :  { %v292_v9 = vpop.xlane.xlu1 %291  ;;  %v216_v13 = vpop.xlane.xlu0 %215 }
  0xec   :  { %v357_v25 = vsel %vm356_vm1, %v331_v10, %v327_v17  ;;  %v230_v31 = vmul.f32 0.005, %v216_v13  ;;  %v381_v61 = vrot.slane %v292_v9, %v326_v63 }
  0xed   :  { %v359_v35 = vsel %vm358_vm2, %v335_v30, %v357_v25 }
  0xee   :  { %v343_v42 = vrot.slane %v230_v31, %v326_v63  ;;  %v361_v43 = vsel %vm360_vm3, %v339_v33, %v359_v35 }
  0xef   :  { %v219_v22 = vpop.xlane.xlu1 %218  ;;  %v295_v26 = vpop.xlane.xlu0 %294 }
  0xf0   :  { %v231_v34 = vmul.f32 0.005, %v219_v22  ;;  %v385_v49 = vrot.slane %v295_v26, %v326_v63  ;;  %v363_v58 = vsel %vm362_vm4, %v343_v42, %v361_v43  ;;  %v507_v43 = vld [vmem:[%s3202_s4] sm:$0xff]  ;;  %s1259_s4 = sld [smem:[#allocation10]] }
  0xf1   :  { %1840 = vmatprep.subr.mxu1 %v507_v43 }
  0xf2   :  { %v347_v46 = vrot.slane %v231_v34, %v326_v63  ;;  %v410_v14 = vsel %vm356_vm1, %v385_v49, %v381_v61  ;;  %1841 = vmatpush3.msra.mxu1 %v507_v43  ;;  %v948_v43 = vld [vmem:[%s3204_s6] sm:$0xff] }
  0xf3   :  { %v222_v37 = vpop.xlane.xlu1 %221  ;;  %v298_v41 = vpop.xlane.xlu0 %297 }
  0xf4   :  { %v232_v40 = vmul.f32 0.005, %v222_v37  ;;  %v389_v60 = vrot.slane %v298_v41, %v326_v63  ;;  %v365_v10 = vsel %vm364_vm5, %v347_v46, %v363_v58  ;;  %v1745_v46 = vld [vmem:[%s3201_s3] ss:$0 sm:$0xff]  ;;  %s2742_s3 = sld [smem:[#allocation9 + $0x3]] }
  0xf5   :  { %v1748_v58 = vld [vmem:[%s3203_s5] ss:$0 sm:$0xff]  ;;  %s1767_s5 = sld [smem:[#allocation10 + $0x1]] }
  0xf6   :  { %v351_v47 = vrot.slane %v232_v40, %v326_v63  ;;  %v411_v25 = vsel %vm358_vm2, %v389_v60, %v410_v14  ;;  %v2399_v14 = vsub.s32 0, %v2367_v59 }
  0xf7   :  { %v225_v48 = vpop.xlane.xlu1 %224  ;;  %v301_v55 = vpop.xlane.xlu0 %300 }
  0xf8   :  { %v233_v54 = vmul.f32 0.005, %v225_v48  ;;  %v393_v6 = vrot.slane %v301_v55, %v326_v63  ;;  %v367_v13 = vsel %vm366_vm6, %v351_v47, %v365_v10  ;;  %3250 = vst [vmem:[#allocation20_spill] sm:$0xff] %v2399_v14 }
  0xfa   :  { %v355_v62 = vrot.slane %v233_v54, %v326_v63  ;;  %v412_v30 = vsel %vm360_vm3, %v393_v6, %v411_v25  ;;  %v614_v25 = vsub.s32 2, %v2367_v59 }
  0xfb   :  { %v304_v17 = vpop.xlane.xlu0 %303  ;;  %v307_v18 = vpop.xlane.xlu1 %306 }
  0xfc   :  { %v369_v22 = vsel %vm368_vm7, %v355_v62, %v367_v13  ;;  %v397_v26 = vrot.slane %v304_v17, %v326_v63  ;;  %v401_v9 = vrot.slane %v307_v18, %v326_v63  ;;  %v607_v13 = vsub.s32 1, %v2367_v59 }
  0xfd   :  { %1837 = vmatprep.mubr.msk.f32.mxu0 %vm425_vm8, %v369_v22 }
  0xfe   :  { %v413_v31 = vsel %vm362_vm4, %v397_v26, %v412_v30  ;;  %v628_v26 = vsub.s32 4, %v2367_v59 }
  0xff   :  { %v310_v33 = vpop.xlane.xlu0 %309  ;;  %v313_v34 = vpop.xlane.xlu1 %312  ;;  %v414_v40 = vsel %vm364_vm5, %v401_v9, %v413_v31  ;;  %v621_v31 = vsub.s32 3, %v2367_v59 }
 0x100   :  { %v405_v35 = vrot.slane %v310_v33, %v326_v63  ;;  %v409_v37 = vrot.slane %v313_v34, %v326_v63  ;;  %v642_v33 = vsub.s32 6, %v2367_v59 }
 0x102   :  { %v415_v41 = vsel %vm366_vm6, %v405_v35, %v414_v40 }
 0x103   :  { %v416_v42 = vsel %vm368_vm7, %v409_v37, %v415_v41  ;;  %v635_v37 = vsub.s32 5, %v2367_v59  ;;  %v649_v41 = vsub.s32 7, %v2367_v59 }
 0x104   :  { %1838 = vmatmul.mubr.msk.f32.vlgmr.msra.gmra.mrb[0].mxu0 %vm425_vm8, %v416_v42 }
 0x1d7   :  { %v1839_v47 = vpop.f32.mrb[0].mxu0 }
 0x1d8   :  { %v502_v63 = vadd.f32 %v1839_v47, %v1745_v46  ;;  %v496_v48 = vpop.f32.mrb[1].mxu0  ;;  %v950_v47 = vld [vmem:[%s3204_s6 + $0x10] sm:$0xff] }
 0x1d9   :  { %v497_v49 = vadd.f32 %v1745_v46, %v496_v48  ;;  %v949_v46 = vld [vmem:[%s3204_s6 + $0x8] sm:$0xff]  ;;  %v951_v48 = vld [vmem:[%s3204_s6 + $0x18] sm:$0xff] }
 0x1da   :  { %v506_v55 = vmax.f32 %v502_v63, 0.0  ;;  %v1869_v63 = vpack.c.bf16 %v949_v46, %v948_v43 }
 0x1db   :  { %v505_v54 = vmax.f32 %v497_v49, 0.0  ;;  %v1873_v49 = vpack.c.bf16 %v951_v48, %v950_v47 }
 0x1dc   :  { %1870 = vmatprep.subr.bf16.mxu0 %v1869_v63 }
 0x1dd   :  { %1842 = vmatprep.mubr.msk.f32.mxu1 %vm425_vm8, %v505_v54  ;;  %v952_v54 = vld [vmem:[%s3204_s6 + $0x20] sm:$0xff]  ;;  %1872 = vmatpush3.bf16.msra.mxu0 %v1869_v63 }
 0x1de   :  { %1843 = vmatmul.mubr.msk.f32.vlgmr.msra.gmra.mrb[0].mxu1 %vm425_vm8, %v506_v55  ;;  %v953_v55 = vld [vmem:[%s3204_s6 + $0x28] sm:$0xff]  ;;  %1874 = vmatprep.subr.bf16.mxu0 %v1873_v49 }
 0x1e1   :  { %1876 = vmatpush3.bf16.msra.mxu0 %v1873_v49 }
 0x2b1   :  { %v1844_v60 = vpop.f32.mrb[0].mxu1 }
 0x2b2   :  { %v593_v61 = vadd.f32 %v1844_v60, %v1748_v58  ;;  %v587_v62 = vpop.f32.mrb[1].mxu1  ;;  %v954_v60 = vld [vmem:[%s3204_s6 + $0x30] sm:$0x3]  ;;  %s2746_s6 = sld [smem:[#allocation12 + $0x4]] }
 0x2b3   :  { %v588_v6 = vadd.f32 %v1748_v58, %v587_v62  ;;  %v1877_v58 = vpack.c.bf16 %v953_v55, %v952_v54 }
 0x2b5   :  { %v596_v10 = vadd.f32 %v593_v61, %v588_v6  ;;  %1878 = vmatprep.subr.bf16.mxu0 %v1877_v58 }
 0x2b6   :  { %1880 = vmatpush3.bf16.msra.mxu0 %v1877_v58 }
 0x2b7   :  { %v597_v17 = vmul.f32 0.5, %v596_v10  ;;  %1857 = vmatprep.subr.msk.mxu0 %vm966_vm9, %v954_v60 }
 0x2b9   :  { %v608_v18 = vrot.slane %v597_v17, %v607_v13  ;;  %v601_v22 = vrot.slane %v597_v17, %v2399_v14  ;;  %v615_v30 = vrot.slane %v597_v17, %v614_v25  ;;  %v629_v9 = vrot.slane %v597_v17, %v628_v26 }
 0x2ba   :  { %v622_v34 = vrot.slane %v597_v17, %v621_v31  ;;  %v643_v35 = vrot.slane %v597_v17, %v642_v33  ;;  %v636_v40 = vrot.slane %v597_v17, %v635_v37  ;;  %v650_v42 = vrot.slane %v597_v17, %v649_v41  ;;  %1858 = vmatpush3.msk.msra.mxu0 %vm966_vm9, %v954_v60 }
 0x2bb   :  { %610 = vbcast.lane.b32.xlu1 %v608_v18, 256  ;;  %603 = vbcast.lane.b32.xlu0 %v601_v22, 256 }
 0x2bf   :  { %617 = vbcast.lane.b32.xlu1 %v615_v30, 256  ;;  %631 = vbcast.lane.b32.xlu0 %v629_v9, 256 }
 0x2c3   :  { %624 = vbcast.lane.b32.xlu1 %v622_v34, 256  ;;  %645 = vbcast.lane.b32.xlu0 %v643_v35, 256 }
 0x2c7   :  { %638 = vbcast.lane.b32.xlu1 %v636_v40, 256 }
 0x2cb   :  { %652 = vbcast.lane.b32.xlu1 %v650_v42, 256 }
 0x32d   :  { %v611_v61 = vpop.permute.xlu1 %610  ;;  %v604_v62 = vpop.permute.xlu0 %603 }
 0x32e   :  { %v2432_v6 = vmul.f32 %v611_v61, %v2204_v27  ;;  %v2435_v10 = vmul.f32 %v611_v61, %v2206_v28  ;;  %v2438_v13 = vmul.f32 %v611_v61, %v2208_v29  ;;  %v2441_v17 = vmul.f32 %v611_v61, %v2210_v32 }
 0x32f   :  { %v2444_v18 = vmul.f32 %v604_v62, %v2170_v7  ;;  %v2447_v22 = vmul.f32 %v604_v62, %v2172_v8  ;;  %v2450_v25 = vmul.f32 %v604_v62, %v2176_v11  ;;  %v2453_v27 = vmul.f32 %v604_v62, %v2178_v12 }
 0x330   :  { %3251 = vst [vmem:[#allocation21_spill] sm:$0xff] %v2432_v6  ;;  %3252 = vst [vmem:[#allocation22_spill] sm:$0xff] %v2435_v10  ;;  %v693_v28 = vsel %vm145_vm0, %v2432_v6, 0.0  ;;  %v694_v29 = vsel %vm145_vm0, %v2435_v10, 0.0  ;;  %v696_v32 = vsel %vm145_vm0, %v2438_v13, 0.0  ;;  %v698_v7 = vsel %vm145_vm0, %v2441_v17, 0.0 }
 0x331   :  { %3253 = vst [vmem:[#allocation23_spill] sm:$0xff] %v2438_v13  ;;  %3254 = vst [vmem:[#allocation24_spill] sm:$0xff] %v2441_v17  ;;  %v695_v8 = vadd.f32 %v694_v29, %v693_v28  ;;  %v813_v11 = vsel %vm145_vm0, %v2432_v6, -inf  ;;  %v814_v12 = vsel %vm145_vm0, %v2435_v10, -inf  ;;  %v816_v26 = vsel %vm145_vm0, %v2438_v13, -inf  ;;  %v618_v41 = vpop.permute.xlu1 %617 }
 0x332   :  { %3255 = vst [vmem:[#allocation25_spill] sm:$0xff] %v2444_v18  ;;  %3256 = vst [vmem:[#allocation26_spill] sm:$0xff] %v2447_v22  ;;  %v815_v30 = vmax.f32 %v813_v11, %v814_v12  ;;  %v818_v9 = vsel %vm145_vm0, %v2441_v17, -inf  ;;  %v686_v31 = vsel %vm145_vm0, %v2444_v18, 0.0  ;;  %v687_v33 = vsel %vm145_vm0, %v2447_v22, 0.0 }
 0x333   :  { %3257 = vst [vmem:[#allocation27_spill] sm:$0xff] %v2450_v25  ;;  %3258 = vst [vmem:[#allocation28_spill] sm:$0xff] %v2453_v27  ;;  %v697_v34 = vadd.f32 %v696_v32, %v695_v8  ;;  %v688_v35 = vadd.f32 %v687_v33, %v686_v31  ;;  %v689_v37 = vsel %vm145_vm0, %v2450_v25, 0.0  ;;  %v691_v40 = vsel %vm145_vm0, %v2453_v27, 0.0 }
 0x334   :  { %v817_v42 = vmax.f32 %v815_v30, %v816_v26  ;;  %v806_v43 = vsel %vm145_vm0, %v2444_v18, -inf  ;;  %v807_v46 = vsel %vm145_vm0, %v2447_v22, -inf  ;;  %v809_v47 = vsel %vm145_vm0, %v2450_v25, -inf }
 0x335   :  { %v699_v63 = vadd.f32 %v698_v7, %v697_v34  ;;  %v690_v48 = vadd.f32 %v689_v37, %v688_v35  ;;  %v808_v49 = vmax.f32 %v806_v43, %v807_v46  ;;  %v811_v54 = vsel %vm145_vm0, %v2453_v27, -inf  ;;  %v632_v46 = vpop.permute.xlu0 %631 }
 0x336   :  { %v819_v55 = vmax.f32 %v817_v42, %v818_v9  ;;  %v2488_v58 = vmul.f32 %v618_v41, %v2156_v0  ;;  %v2491_v60 = vmul.f32 %v618_v41, %v2158_v1  ;;  %v2494_v61 = vmul.f32 %v618_v41, %v2160_v2 }
 0x337   :  { %v749_v62 = vsel %vm145_vm0, %v699_v63, 0.0  ;;  %v692_v28 = vadd.f32 %v691_v40, %v690_v48  ;;  %v810_v29 = vmax.f32 %v808_v49, %v809_v47  ;;  %v2498_v32 = vmul.f32 %v618_v41, %v2162_v3 }
 0x338   :  { %3259 = vst [vmem:[#allocation29_spill] sm:$0xff] %v2488_v58  ;;  %3260 = vst [vmem:[#allocation30_spill] sm:$0xff] %v2491_v60  ;;  %v750_v7 = vrot.slane %v749_v62, 4  ;;  %v869_v8 = vsel %vm145_vm0, %v819_v55, -inf  ;;  %v700_v0 = vsel %vm145_vm0, %v2488_v58, 0.0  ;;  %v701_v1 = vsel %vm145_vm0, %v2491_v60, 0.0 }
 0x339   :  { %3261 = vst [vmem:[#allocation31_spill] sm:$0xff] %v2494_v61  ;;  %3262 = vst [vmem:[#allocation32_spill] sm:$0xff] %v2498_v32  ;;  %v870_v11 = vrot.slane %v869_v8, 4  ;;  %v742_v2 = vsel %vm145_vm0, %v692_v28, 0.0  ;;  %v812_v12 = vmax.f32 %v810_v29, %v811_v54  ;;  %v702_v26 = vadd.f32 %v701_v1, %v700_v0 }
 0x33a   :  { %v751_v30 = vadd.f32 %v750_v7, %v749_v62  ;;  %v743_v9 = vrot.slane %v742_v2, 4  ;;  %v703_v3 = vsel %vm145_vm0, %v2494_v61, 0.0  ;;  %v705_v31 = vsel %vm145_vm0, %v2498_v32, 0.0 }
 0x33b   :  { %v871_v33 = vmax.f32 %v869_v8, %v870_v11  ;;  %v862_v34 = vsel %vm145_vm0, %v812_v12, -inf  ;;  %v704_v35 = vadd.f32 %v703_v3, %v702_v26  ;;  %v820_v37 = vsel %vm145_vm0, %v2488_v58, -inf }
 0x33c   :  { %v752_v40 = vrot.slane %v751_v30, 2  ;;  %v744_v41 = vadd.f32 %v743_v9, %v742_v2  ;;  %v863_v42 = vrot.slane %v862_v34, 4  ;;  %v821_v43 = vsel %vm145_vm0, %v2491_v60, -inf }
 0x33d   :  { %v872_v47 = vrot.slane %v871_v33, 2  ;;  %v706_v63 = vadd.f32 %v705_v31, %v704_v35  ;;  %v822_v48 = vmax.f32 %v820_v37, %v821_v43  ;;  %v823_v49 = vsel %vm145_vm0, %v2494_v61, -inf }
 0x33e   :  { %v753_v54 = vadd.f32 %v752_v40, %v751_v30  ;;  %v745_v55 = vrot.slane %v744_v41, 2  ;;  %v864_v62 = vmax.f32 %v862_v34, %v863_v42  ;;  %v825_v28 = vsel %vm145_vm0, %v2498_v32, -inf }
 0x33f   :  { %v873_v29 = vmax.f32 %v871_v33, %v872_v47  ;;  %v756_v7 = vsel %vm145_vm0, %v706_v63, 0.0  ;;  %v824_v8 = vmax.f32 %v822_v48, %v823_v49  ;;  %v2521_v0 = vmul.f32 %v632_v46, %v2220_v39  ;;  %v625_v49 = vpop.permute.xlu1 %624 }
 0x340   :  { %v754_v1 = vrot.slane %v753_v54, 1  ;;  %v746_v11 = vadd.f32 %v745_v55, %v744_v41  ;;  %v865_v2 = vrot.slane %v864_v62, 2  ;;  %v757_v12 = vrot.slane %v756_v7, 4 }
 0x341   :  { %3263 = vst [vmem:[#allocation33_spill] sm:$0xff] %v2521_v0  ;;  %v874_v26 = vrot.slane %v873_v29, 1  ;;  %v826_v9 = vmax.f32 %v824_v8, %v825_v28  ;;  %v2524_v30 = vmul.f32 %v632_v46, %v2226_v44  ;;  %v2528_v37 = vmul.f32 %v632_v46, %v2228_v45 }
 0x342   :  { %v755_v3 = vadd.f32 %v754_v1, %v753_v54  ;;  %v747_v31 = vrot.slane %v746_v11, 1  ;;  %v758_v34 = vadd.f32 %v757_v12, %v756_v7  ;;  %v866_v35 = vmax.f32 %v864_v62, %v865_v2 }
 0x343   :  { %3264 = vst [vmem:[#allocation34_spill] sm:$0xff] %v2524_v30  ;;  %v876_v33 = vsel %vm145_vm0, %v826_v9, -inf  ;;  %3265 = vst [vmem:[#allocation35_spill] sm:$0xff] %v2528_v37  ;;  %v714_v39 = vsel %vm145_vm0, %v2521_v0, 0.0  ;;  %v2533_v41 = vmul.f32 %v632_v46, %v2233_v50  ;;  %v2535_v42 = vmax.f32 %v873_v29, %v874_v26 }
 0x344   :  { %v759_v40 = vrot.slane %v758_v34, 2  ;;  %v715_v44 = vsel %vm145_vm0, %v2524_v30, 0.0  ;;  %v2539_v43 = vmul.f32 0.03125, %v755_v3  ;;  %v748_v47 = vadd.f32 %v747_v31, %v746_v11 }
 0x345   :  { %3266 = vst [vmem:[#allocation36_spill] sm:$0xff] %v2533_v41  ;;  %v877_v63 = vrot.slane %v876_v33, 4  ;;  %v716_v48 = vadd.f32 %v715_v44, %v714_v39  ;;  %v867_v45 = vrot.slane %v866_v35, 1  ;;  %v717_v54 = vsel %vm145_vm0, %v2528_v37, 0.0 }
 0x346   :  { %v834_v55 = vsel %vm145_vm0, %v2521_v0, -inf  ;;  %v835_v50 = vsel %vm145_vm0, %v2524_v30, -inf  ;;  %v760_v46 = vadd.f32 %v759_v40, %v758_v34  ;;  %v719_v28 = vsel %vm145_vm0, %v2533_v41, 0.0 }
 0x347   :  { %v718_v62 = vadd.f32 %v717_v54, %v716_v48  ;;  %v836_v29 = vmax.f32 %v834_v55, %v835_v50  ;;  %v837_v7 = vsel %vm145_vm0, %v2528_v37, -inf  ;;  %v2552_v8 = vmul.f32 %v625_v49, %v2184_v15 }
 0x348   :  { %v2555_v1 = vmul.f32 %v625_v49, %v2190_v19  ;;  %v2558_v11 = vmul.f32 %v625_v49, %v2192_v20  ;;  %v2560_v2 = vmul.f32 0.03125, %v748_v47  ;;  %v878_v12 = vmax.f32 %v876_v33, %v877_v63  ;;  %v646_v63 = vpop.permute.xlu0 %645 }
 0x349   :  { %3267 = vst [vmem:[#allocation37_spill] sm:$0xff] %v2552_v8  ;;  %v720_v26 = vadd.f32 %v719_v28, %v718_v62  ;;  %v838_v9 = vmax.f32 %v836_v29, %v837_v7  ;;  %v839_v3 = vsel %vm145_vm0, %v2533_v41, -inf  ;;  %v2565_v31 = vmul.f32 %v625_v49, %v2194_v21 }
 0x34a   :  { %3268 = vst [vmem:[#allocation38_spill] sm:$0xff] %v2555_v1  ;;  %3269 = vst [vmem:[#allocation39_spill] sm:$0xff] %v2558_v11  ;;  %v707_v15 = vsel %vm145_vm0, %v2552_v8, 0.0  ;;  %v708_v19 = vsel %vm145_vm0, %v2555_v1, 0.0  ;;  %v2571_v34 = vmax.f32 %v866_v35, %v867_v45  ;;  %v761_v40 = vrot.slane %v760_v46, 1 }
 0x34b   :  { %3270 = vst [vmem:[#allocation40_spill] sm:$0xff] %v2565_v31  ;;  %v770_v20 = vsel %vm145_vm0, %v720_v26, 0.0  ;;  %v840_v39 = vmax.f32 %v838_v9, %v839_v3  ;;  %v709_v33 = vadd.f32 %v708_v19, %v707_v15  ;;  %v710_v47 = vsel %vm145_vm0, %v2558_v11, 0.0 }
 0x34c   :  { %v771_v44 = vrot.slane %v770_v20, 4  ;;  %v827_v21 = vsel %vm145_vm0, %v2552_v8, -inf  ;;  %v879_v48 = vrot.slane %v878_v12, 2  ;;  %v828_v35 = vsel %vm145_vm0, %v2555_v1, -inf }
 0x34d   :  { %v890_v49 = vsel %vm145_vm0, %v840_v39, -inf  ;;  %v711_v54 = vadd.f32 %v710_v47, %v709_v33  ;;  %v712_v55 = vsel %vm145_vm0, %v2565_v31, 0.0  ;;  %v829_v50 = vmax.f32 %v827_v21, %v828_v35 }
 0x34e   :  { %v891_v45 = vrot.slane %v890_v49, 4  ;;  %v830_v62 = vsel %vm145_vm0, %v2558_v11, -inf  ;;  %v772_v28 = vadd.f32 %v771_v44, %v770_v20  ;;  %v2586_v7 = vmul.f32 %v646_v63, %v2262_v16 }
 0x34f   :  { %v713_v29 = vadd.f32 %v712_v55, %v711_v54  ;;  %v2589_v26 = vmul.f32 %v646_v63, %v2266_v23  ;;  %v831_v3 = vmax.f32 %v829_v50, %v830_v62  ;;  %v832_v15 = vsel %vm145_vm0, %v2565_v31, -inf }
 0x350   :  { %3271 = vst [vmem:[#allocation41_spill] sm:$0xff] %v2586_v7  ;;  %v892_v9 = vmax.f32 %v890_v49, %v891_v45  ;;  %v2594_v19 = vmul.f32 %v646_v63, %v2268_v24  ;;  %v2598_v33 = vmul.f32 %v646_v63, %v2277_v36  ;;  %v728_v16 = vsel %vm145_vm0, %v2586_v7, 0.0  ;;  %v639_v45 = vpop.permute.xlu1 %638 }
 0x351   :  { %3272 = vst [vmem:[#allocation42_spill] sm:$0xff] %v2589_v26  ;;  %v763_v39 = vsel %vm145_vm0, %v713_v29, 0.0  ;;  %v729_v23 = vsel %vm145_vm0, %v2589_v26, 0.0  ;;  %v762_v20 = vadd.f32 %v761_v40, %v760_v46  ;;  %v2604_v44 = vmax.f32 %v878_v12, %v879_v48 }
 0x352   :  { %3273 = vst [vmem:[#allocation43_spill] sm:$0xff] %v2594_v19  ;;  %3274 = vst [vmem:[#allocation44_spill] sm:$0xff] %v2598_v33  ;;  %v764_v47 = vrot.slane %v763_v39, 4  ;;  %v833_v21 = vmax.f32 %v831_v3, %v832_v15  ;;  %v773_v49 = vrot.slane %v772_v28, 2  ;;  %v893_v54 = vrot.slane %v892_v9, 2 }
 0x353   :  { %v730_v24 = vadd.f32 %v729_v23, %v728_v16  ;;  %v848_v35 = vsel %vm145_vm0, %v2586_v7, -inf  ;;  %v731_v55 = vsel %vm145_vm0, %v2594_v19, 0.0  ;;  %v849_v46 = vsel %vm145_vm0, %v2589_v26, -inf }
 0x354   :  { %v765_v36 = vadd.f32 %v764_v47, %v763_v39  ;;  %v883_v63 = vsel %vm145_vm0, %v833_v21, -inf  ;;  %v733_v48 = vsel %vm145_vm0, %v2598_v33, 0.0  ;;  %v850_v50 = vmax.f32 %v848_v35, %v849_v46 }
 0x355   :  { %v884_v12 = vrot.slane %v883_v63, 4  ;;  %v732_v40 = vadd.f32 %v731_v55, %v730_v24  ;;  %v851_v29 = vsel %vm145_vm0, %v2594_v19, -inf  ;;  %v853_v3 = vsel %vm145_vm0, %v2598_v33, -inf }
 0x356   :  { %v766_v62 = vrot.slane %v765_v36, 2  ;;  %v2620_v15 = vmul.f32 %v639_v45, %v2235_v51  ;;  %v852_v23 = vmax.f32 %v850_v50, %v851_v29  ;;  %v2623_v47 = vmul.f32 %v639_v45, %v2242_v56  ;;  %v653_v50 = vpop.permute.xlu1 %652 }
 0x357   :  { %v885_v39 = vmax.f32 %v883_v63, %v884_v12  ;;  %v734_v16 = vadd.f32 %v733_v48, %v732_v40  ;;  %v2626_v24 = vmul.f32 %v639_v45, %v2244_v57  ;;  %v2629_v35 = vmul.f32 %v639_v45, %v2253_v5 }
 0x358   :  { %3275 = vst [vmem:[#allocation45_spill] sm:$0xff] %v2620_v15  ;;  %3276 = vst [vmem:[#allocation46_spill] sm:$0xff] %v2623_v47  ;;  %v767_v21 = vadd.f32 %v766_v62, %v765_v36  ;;  %v721_v55 = vsel %vm145_vm0, %v2620_v15, 0.0  ;;  %v854_v33 = vmax.f32 %v852_v23, %v853_v3  ;;  %v722_v63 = vsel %vm145_vm0, %v2623_v47, 0.0 }
 0x359   :  { %3277 = vst [vmem:[#allocation47_spill] sm:$0xff] %v2626_v24  ;;  %3278 = vst [vmem:[#allocation48_spill] sm:$0xff] %v2629_v35  ;;  %v886_v46 = vrot.slane %v885_v39, 2  ;;  %v784_v51 = vsel %vm145_vm0, %v734_v16, 0.0  ;;  %v2636_v12 = vmul.f32 0.03125, %v762_v20  ;;  %v881_v56 = vrot.slane %v2604_v44, 1 }
 0x35a   :  { %v2639_v36 = vadd.f32 %v773_v49, %v772_v28  ;;  %v723_v57 = vadd.f32 %v722_v63, %v721_v55  ;;  %v785_v40 = vrot.slane %v784_v51, 4  ;;  %v904_v5 = vsel %vm145_vm0, %v854_v33, -inf }
 0x35b   :  { %v724_v45 = vsel %vm145_vm0, %v2626_v24, 0.0  ;;  %v841_v48 = vsel %vm145_vm0, %v2620_v15, -inf  ;;  %v2646_v62 = vmax.f32 %v892_v9, %v893_v54  ;;  %v768_v29 = vrot.slane %v767_v21, 1 }
 0x35c   :  { %v725_v20 = vadd.f32 %v724_v45, %v723_v57  ;;  %v842_v3 = vsel %vm145_vm0, %v2623_v47, -inf  ;;  %v887_v28 = vmax.f32 %v885_v39, %v886_v46  ;;  %v905_v49 = vrot.slane %v904_v5, 4 }
 0x35d   :  { %v726_v16 = vsel %vm145_vm0, %v2629_v35, 0.0  ;;  %v843_v33 = vmax.f32 %v841_v48, %v842_v3  ;;  %v844_v55 = vsel %vm145_vm0, %v2626_v24, -inf  ;;  %v2655_v63 = vmul.f32 %v653_v50, %v2281_v38 }
 0x35e   :  { %v727_v23 = vadd.f32 %v726_v16, %v725_v20  ;;  %v2658_v9 = vmul.f32 %v653_v50, %v2292_v52  ;;  %v786_v54 = vadd.f32 %v785_v40, %v784_v51  ;;  %v846_v39 = vsel %vm145_vm0, %v2629_v35, -inf }
 0x35f   :  { %3279 = vst [vmem:[#allocation49_spill] sm:$0xff] %v2655_v63  ;;  %v845_v57 = vmax.f32 %v843_v33, %v844_v55  ;;  %v2663_v46 = vmul.f32 %v653_v50, %v2294_v53  ;;  %v2667_v48 = vmul.f32 %v653_v50, %v2305_v4  ;;  %v735_v38 = vsel %vm145_vm0, %v2655_v63, 0.0 }
 0x360   :  { %3280 = vst [vmem:[#allocation50_spill] sm:$0xff] %v2658_v9  ;;  %v777_v45 = vsel %vm145_vm0, %v727_v23, 0.0  ;;  %v736_v52 = vsel %vm145_vm0, %v2658_v9, 0.0  ;;  %v888_v20 = vrot.slane %v887_v28, 1  ;;  %v906_v16 = vmax.f32 %v904_v5, %v905_v49 }
 0x361   :  { %3281 = vst [vmem:[#allocation51_spill] sm:$0xff] %v2663_v46  ;;  %3282 = vst [vmem:[#allocation52_spill] sm:$0xff] %v2667_v48  ;;  %v778_v51 = vrot.slane %v777_v45, 4  ;;  %v847_v40 = vmax.f32 %v845_v57, %v846_v39  ;;  %v737_v3 = vadd.f32 %v736_v52, %v735_v38  ;;  %v738_v53 = vsel %vm145_vm0, %v2663_v46, 0.0 }
 0x362   :  { %v855_v33 = vsel %vm145_vm0, %v2655_v63, -inf  ;;  %v856_v4 = vsel %vm145_vm0, %v2658_v9, -inf  ;;  %v740_v57 = vsel %vm145_vm0, %v2667_v48, 0.0  ;;  %v858_v5 = vsel %vm145_vm0, %v2663_v46, -inf }
 0x363   :  { %v779_v50 = vadd.f32 %v778_v51, %v777_v45  ;;  %v897_v23 = vsel %vm145_vm0, %v847_v40, -inf  ;;  %v739_v55 = vadd.f32 %v738_v53, %v737_v3  ;;  %v857_v35 = vmax.f32 %v855_v33, %v856_v4 }
 0x364   :  { %v898_v41 = vrot.slane %v897_v23, 4  ;;  %v769_v49 = vadd.f32 %v768_v29, %v767_v21  ;;  %v787_v19 = vrot.slane %v786_v54, 2  ;;  %v882_v24 = vmax.f32 %v2604_v44, %v881_v56 }
 0x365   :  { %v780_v39 = vrot.slane %v779_v50, 2  ;;  %v741_v38 = vadd.f32 %v740_v57, %v739_v55  ;;  %v859_v52 = vmax.f32 %v857_v35, %v858_v5  ;;  %v860_v45 = vsel %vm145_vm0, %v2667_v48, -inf }
 0x366   :  { %v899_v37 = vmax.f32 %v897_v23, %v898_v41  ;;  %v775_v51 = vrot.slane %v2639_v36, 1  ;;  %v788_v33 = vadd.f32 %v787_v19, %v786_v54  ;;  %v895_v4 = vrot.slane %v2646_v62, 1 }
 0x367   :  { %v791_v40 = vsel %vm145_vm0, %v741_v38, 0.0  ;;  %v861_v3 = vmax.f32 %v859_v52, %v860_v45  ;;  %v781_v53 = vadd.f32 %v780_v39, %v779_v50  ;;  %v907_v21 = vrot.slane %v906_v16, 2 }
 0x368   :  { %v900_v29 = vrot.slane %v899_v37, 2  ;;  %v792_v55 = vrot.slane %v791_v40, 4  ;;  %v889_v35 = vmax.f32 %v887_v28, %v888_v20  ;;  %v801_v41 = vmul.f32 0.03125, %v769_v49 }
 0x369   :  { %v911_v57 = vsel %vm145_vm0, %v861_v3, -inf  ;;  %v782_v44 = vrot.slane %v781_v53, 1  ;;  %v926_v38 = vsel %vm356_vm1, %v2539_v43, %v2560_v2  ;;  %v776_v50 = vadd.f32 %v775_v51, %v2639_v36 }
 0x36a   :  { %v901_v56 = vmax.f32 %v899_v37, %v900_v29  ;;  %v912_v23 = vrot.slane %v911_v57, 4  ;;  %v793_v5 = vadd.f32 %v792_v55, %v791_v40  ;;  %v789_v54 = vrot.slane %v788_v33, 1 }
 0x36b   :  { %v783_v19 = vadd.f32 %v782_v44, %v781_v53  ;;  %v927_v39 = vsel %vm358_vm2, %v2636_v12, %v926_v38  ;;  %v908_v20 = vmax.f32 %v906_v16, %v907_v21  ;;  %v941_v37 = vsel %vm356_vm1, %v2535_v42, %v2571_v34 }
 0x36c   :  { %v794_v52 = vrot.slane %v793_v5, 2  ;;  %v902_v28 = vrot.slane %v901_v56, 1  ;;  %v913_v45 = vmax.f32 %v911_v57, %v912_v23  ;;  %v928_v49 = vsel %vm360_vm3, %v801_v41, %v927_v39  ;;  %v1144_v39 = vld [vmem:[#allocation7 + $0x8] sm:$0xff] }
 0x36d   :  { %v803_v3 = vmul.f32 0.03125, %v783_v19  ;;  %v942_v2 = vsel %vm358_vm2, %v882_v24, %v941_v37  ;;  %v790_v36 = vadd.f32 %v789_v54, %v788_v33  ;;  %v802_v51 = vmul.f32 0.03125, %v776_v50  ;;  %v1047_v50 = vld [vmem:[%s3206_s8] sm:$0xff]  ;;  %v1048_v19 = vld [vmem:[%s3206_s8 + $0x8] sm:$0x3]  ;;  %s2760_s8 = sld [smem:[#allocation12 + $0x203]] }
 0x36e   :  { %v795_v40 = vadd.f32 %v794_v52, %v793_v5  ;;  %v914_v43 = vrot.slane %v913_v45, 2  ;;  %v903_v53 = vmax.f32 %v901_v56, %v902_v28  ;;  %v943_v12 = vsel %vm360_vm3, %v889_v35, %v942_v2  ;;  %v1146_v52 = vld [vmem:[#allocation7 + $0x18] sm:$0xff]  ;;  %v1148_v2 = vld [vmem:[#allocation7 + $0x28] sm:$0xff] }
 0x36f   :  { %v896_v16 = vmax.f32 %v2646_v62, %v895_v4  ;;  %v909_v21 = vrot.slane %v908_v20, 1  ;;  %v929_v57 = vsel %vm362_vm4, %v802_v51, %v928_v49  ;;  %v804_v23 = vmul.f32 0.03125, %v790_v36  ;;  %v1150_v36 = vld [vmem:[#allocation7 + $0x38] sm:$0xff] }
 0x370   :  { %v796_v29 = vrot.slane %v795_v40, 1  ;;  %v915_v55 = vmax.f32 %v913_v45, %v914_v43  ;;  %v930_v42 = vsel %vm364_vm5, %v803_v3, %v929_v57  ;;  %v1881_v54 = vpack.c.bf16 %v1048_v19, %v1047_v50  ;;  %v1145_v3 = vld [vmem:[#allocation7 + $0x10] sm:$0xff]  ;;  %v1152_v57 = vld [vmem:[#allocation7 + $0x48] sm:$0xff] }
 0x371   :  { %v944_v41 = vsel %vm362_vm4, %v896_v16, %v943_v12  ;;  %v910_v56 = vmax.f32 %v908_v20, %v909_v21  ;;  %v931_v35 = vsel %vm366_vm6, %v804_v23, %v930_v42  ;;  %v1887_v28 = vpack.c.bf16 %v1146_v52, %v1144_v39  ;;  %v1751_v20 = vld [vmem:[%s3205_s7] ss:$0 sm:$0xff]  ;;  %v1149_v21 = vld [vmem:[#allocation7 + $0x30] sm:$0xff]  ;;  %s2758_s7 = sld [smem:[#allocation12 + $0x184]] }
 0x372   :  { %v797_v44 = vadd.f32 %v796_v29, %v795_v40  ;;  %v916_v34 = vrot.slane %v915_v55, 1  ;;  %v945_v24 = vsel %vm364_vm5, %v903_v53, %v944_v41  ;;  %1883 = vmatprep.subr.msk.bf16.mxu1 %vm1882_vm11, %v1881_v54  ;;  %v1143_v40 = vld [vmem:[#allocation7] sm:$0xff]  ;;  %v1891_v29 = vpack.c.bf16 %v1150_v36, %v1148_v2  ;;  %v1153_v41 = vld [vmem:[#allocation7 + $0x50] sm:$0xff] }
 0x373   :  { %v946_v4 = vsel %vm366_vm6, %v910_v56, %v945_v24  ;;  %1886 = vmatpush3.bf16.msk.msra.mxu1 %vm1882_vm11, %v1881_v54  ;;  %v1889_v53 = vpack.c.bf16 %v1145_v3, %v1143_v40  ;;  %v1147_v16 = vld [vmem:[#allocation7 + $0x20] sm:$0xff]  ;;  %v2040_v23 = vmov 0.0   ;;  %v2786_v40 = vstv %s1774_s0  ;;  %s2874_s0 = sld [smem:[#allocation12 + $0x100]] }
 0x374   :  { %v805_v33 = vmul.f32 0.03125, %v797_v44  ;;  %v917_v5 = vmax.f32 %v915_v55, %v916_v34  ;;  %1888 = vmatprep.subr.bf16.mxu1 %v1887_v28  ;;  %v1893_v55 = vpack.c.bf16 %v1149_v21, %v1147_v16  ;;  %v1154_v44 = vld [vmem:[#allocation7 + $0x58] sm:$0xff]  ;;  %v1151_v42 = vld [vmem:[#allocation7 + $0x40] sm:$0xff]  ;;  %v2766_v28 = vstv %s1766_s25  ;;  %s2784_s25 = sld [smem:[#allocation12 + $0x304]] }
 0x375   :  { %v1895_v34 = vpack.c.bf16 %v1154_v44, %v1152_v57  ;;  %v1897_v24 = vpack.c.bf16 %v1153_v41, %v1151_v42  ;;  %v1155_v56 = vld [vmem:[#allocation7 + $0x60] sm:$0x3]  ;;  %v2788_v3 = vstv %s1781_s10  ;;  %v2792_v2 = vstv %s1788_s29  ;;  %s2878_s10 = sld [smem:[#allocation12 + $0x180]] }
 0x376   :  { %v932_v62 = vsel %vm368_vm7, %v805_v33, %v931_v35  ;;  %v947_v38 = vsel %vm368_vm7, %v917_v5, %v946_v4  ;;  %v1156_v33 = vld [vmem:[#allocation7 + $0x68] sm:$0x3]  ;;  %v1755_v5 = vld [vmem:[%s3207_s9] ss:$0 sm:$0xff]  ;;  %s1252_s9 = sld [smem:[#allocation9]]  ;;  %v2794_v36 = vstv %s1794_s30  ;;  %v2804_v16 = vstv %s1809_s22  ;;  %s2920_s22 = sld [smem:[#allocation12 + $0x181]] }
 0x377   :  { %1859 = vmatprep.mubr.msk.f32.mxu0 %vm145_vm0, %v932_v62  ;;  %s2892_s29 = sld [smem:[#allocation12 + $0x280]]  ;;  %v3295_v0 = vstv %s2760_s8  ;;  %s2994_s8 = sld [smem:[#allocation12 + $0x282]] }
 0x378   :  { %1860 = vmatmul.mubr.msk.f32.vlgmr.msra.gmra.mrb[2].mxu0 %vm145_vm0, %v947_v38  ;;  %s2894_s30 = sld [smem:[#allocation12 + $0x300]] }
 0x379   :  { %v1350_v17 = vstv %s2874_s0 }
 0x37c   :  { %v2764_v52 = vstv %s1252_s9  ;;  %s2782_s9 = sld [smem:[#allocation12 + $0x303]] }
 0x44b   :  { %v1861_v45 = vpop.f32.mrb[2].mxu0 }
 0x44c   :  { %v1042_v49 = vadd.f32 %v1861_v45, %v1751_v20  ;;  %v1036_v37 = vpop.f32.mrb[3].mxu0  ;;  %v2774_v45 = vstv %s1767_s5  ;;  %s2872_s5 = sld [smem:[#allocation12 + $0x80]] }
 0x44d   :  { %v1037_v43 = vadd.f32 %v1751_v20, %v1036_v37  ;;  %v2772_v20 = vstv %s1259_s4  ;;  %v2780_v37 = vstv %s2742_s3  ;;  %s2844_s3 = sld [smem:[#allocation12 + $0x384]]  ;;  %s2868_s4 = sld [smem:[#allocation12]] }
 0x44e   :  { %v1046_v12 = vmax.f32 %v1042_v49, 0.0  ;;  %v2777_v49 = vstv %s2740_s26  ;;  %s2842_s26 = sld [smem:[#allocation12 + $0x383]] }
 0x44f   :  { %v1045_v51 = vmax.f32 %v1037_v43, 0.0  ;;  %v2790_v43 = vstv %s1787_s19  ;;  %s2880_s19 = sld [smem:[#allocation12 + $0x200]] }
 0x451   :  { %1866 = vmatprep.mubr.msk.f32.mxu1 %vm1056_vm12, %v1045_v51  ;;  %v2796_v51 = vstv %s1795_s15  ;;  %s2896_s15 = sld [smem:[#allocation12 + $0x1]] }
 0x452   :  { %1867 = vmatmul.mubr.msk.f32.vlgmr.msra.gmra.mrb[2].mxu1 %vm1056_vm12, %v1046_v12  ;;  %v2800_v12 = vstv %s1802_s18  ;;  %s2908_s18 = sld [smem:[#allocation12 + $0x81]]  ;;  %v1311_v32 = vstv %s2872_s5 }
 0x453   :  { %1890 = vmatpush1.bf16.msra.mxu1 %v1889_v53  ;;  %1230 = vmatprep.mubr.f32.mxu1 %v2040_v23  ;;  %v2798_v53 = vstv %s1801_s17  ;;  %s2906_s17 = sld [smem:[#allocation12 + $0x380]] }
 0x454   :  { %1892 = vmatprep.subr.bf16.mxu1 %v1891_v29  ;;  %v2802_v29 = vstv %s1808_s21  ;;  %s2910_s21 = sld [smem:[#allocation12 + $0x101]] }
 0x457   :  { %1894 = vmatpush1.bf16.msra.mxu1 %v1893_v55 }
 0x458   :  { %1896 = vmatprep.subr.bf16.mxu1 %v1895_v34  ;;  %v1314_v61 = vstv %s2908_s18 }
 0x45b   :  { %1898 = vmatpush1.bf16.msra.mxu1 %v1897_v24 }
 0x45c   :  { %1759 = vmatprep.subr.msk.mxu1 %vm966_vm9, %v1156_v33 }
 0x45f   :  { %1760 = vmatpush1.msk.msra.mxu1 %vm966_vm9, %v1155_v56 }
 0x525   :  { %v1868_v35 = vpop.f32.mrb[2].mxu1 }
 0x526   :  { %v2729_v62 = vadd.f32 %v1868_v35, %v1755_v5  ;;  %v1132_v4 = vpop.f32.mrb[3].mxu1 }
 0x527   :  { %v2731_v38 = vadd.f32 %v1755_v5, %v1132_v4 }
 0x528   :  { %v1258_v23 = vmul.f32 %v2764_v52, %v2729_v62  ;;  %v1297_v5 = vmul.f32 %v2766_v28, %v2729_v62  ;;  %v1375_v33 = vmul.f32 %v2780_v37, %v2729_v62  ;;  %v1414_v4 = vmul.f32 %v2790_v43, %v2729_v62 }
 0x529   :  { %v1141_v50 = vadd.f32 %v2729_v62, %v2731_v38  ;;  %v1257_v41 = vmul.f32 %v2764_v52, %v2731_v38  ;;  %v1296_v56 = vmul.f32 %v2766_v28, %v2731_v38  ;;  %v1374_v24 = vmul.f32 %v2780_v37, %v2731_v38 }
 0x52a   :  { %v1413_v35 = vmul.f32 %v2790_v43, %v2731_v38  ;;  %v1265_v55 = vadd.f32 %v2772_v20, %v1258_v23  ;;  %v1452_v34 = vmul.f32 %v2794_v36, %v2731_v38  ;;  %v1453_v44 = vmul.f32 %v2794_v36, %v2729_v62 }
 0x52b   :  { %v1142_v19 = vmul.f32 0.5, %v1141_v50  ;;  %v1335_v50 = vmul.f32 %v2777_v49, %v2731_v38  ;;  %v1264_v57 = vadd.f32 %v2772_v20, %v1257_v41  ;;  %v1303_v42 = vadd.f32 %v2774_v45, %v1296_v56 }
 0x52c   :  { %v1491_v21 = vmul.f32 %v2798_v53, %v2731_v38  ;;  %v1492_v41 = vmul.f32 %v2798_v53, %v2729_v62  ;;  %v1530_v46 = vmul.f32 %v2802_v29, %v2731_v38  ;;  %v1531_v9 = vmul.f32 %v2802_v29, %v2729_v62 }
 0x52d   :  { %1761 = vmatmul.mubr.msk.f32.vlgmr.msra.gmra.mrb[4].mxu1 %vm145_vm0, %v1142_v19  ;;  %v1336_v19 = vmul.f32 %v2777_v49, %v2729_v62  ;;  %v1342_v23 = vadd.f32 %v2786_v40, %v1335_v50  ;;  %v1381_v56 = vadd.f32 %v2788_v3, %v1374_v24  ;;  %v1269_v26 = vmax.f32 %v1264_v57, 0.0 }
 0x52e   :  { %v1270_v47 = vmax.f32 %v1265_v55, 0.0  ;;  %v1420_v30 = vadd.f32 %v2792_v2, %v1413_v35  ;;  %v1421_v63 = vadd.f32 %v2792_v2, %v1414_v4  ;;  %v1308_v7 = vmax.f32 %v1303_v42, 0.0 }
 0x52f   :  { %v1343_v48 = vadd.f32 %v2786_v40, %v1336_v19  ;;  %v1459_v19 = vadd.f32 %v2796_v51, %v1452_v34  ;;  %v1460_v15 = vadd.f32 %v2796_v51, %v1453_v44  ;;  %v1347_v62 = vmax.f32 %v1342_v23, 0.0 }
 0x530   :  { %v1498_v55 = vadd.f32 %v2800_v12, %v1491_v21  ;;  %v1499_v57 = vadd.f32 %v2800_v12, %v1492_v41  ;;  %v1386_v42 = vmax.f32 %v1381_v56, 0.0  ;;  %v1537_v44 = vadd.f32 %v2804_v16, %v1530_v46 }
 0x531   :  { %v1348_v38 = vmax.f32 %v1343_v48, 0.0  ;;  %v1538_v24 = vadd.f32 %v2804_v16, %v1531_v9  ;;  %v1425_v48 = vmax.f32 %v1420_v30, 0.0  ;;  %v1556_v21 = vstv %s2842_s26 }
 0x532   :  { %v1560_v35 = vstv %s2844_s3  ;;  %v3283_v4 = vstv %s2744_s23  ;;  %v3284_v41 = vstv %s2746_s6  ;;  %v1464_v46 = vmax.f32 %v1459_v19, 0.0  ;;  %s2922_s23 = sld [smem:[#allocation12 + $0x201]] }
 0x533   :  { %v2890_v23 = vmul.f32 %v3284_v41, %v1270_v47  ;;  %v1465_v56 = vmax.f32 %v1460_v15, 0.0  ;;  %v3286_v30 = vstv %s2748_s1  ;;  %v3287_v9 = vstv %s2750_s12  ;;  %s2940_s6 = sld [smem:[#allocation12 + $0x281]] }
 0x534   :  { %v1503_v47 = vmax.f32 %v1498_v55, 0.0  ;;  %v3289_v15 = vstv %s2752_s16  ;;  %v1542_v41 = vmax.f32 %v1537_v44, 0.0  ;;  %s2954_s1 = sld [smem:[#allocation12 + $0x301]]  ;;  %s2971_s16 = sld [smem:[#allocation12 + $0x82]] }
 0x535   :  { %3285 = vst [vmem:[#allocation53_spill] sm:$0xff] %v2890_v23  ;;  %v2914_v19 = vmul.f32 %v3289_v15, %v1347_v62  ;;  %v2934_v62 = vmul.f32 %v3295_v0, %v1425_v48  ;;  %s2956_s12 = sld [smem:[#allocation12 + $0x381]] }
 0x537   :  { %3296 = vst [vmem:[#allocation57_spill] sm:$0xff] %v2934_v62 }
 0x53a   :  { %v1509_v10 = vstv %s2954_s1 }
 0x53b   :  { %v1548_v58 = vstv %s2956_s12 }
 0x600   :  { %v2736_v54 = vpop.f32.mrb[4].mxu1 }
 0x601   :  { %1242 = vrot.lane.b32.xlu1 %v2736_v54, %s2041_s11  ;;  %1238 = vrot.lane.b32.xlu0 %v2736_v54, %s2042_s24  ;;  %v1234_v39 = vpop.f32.mrb[5].mxu1  ;;  %s2768_s24 = sld [smem:[#allocation12 + $0x283]]  ;;  %v1254_v44 = vmul.f32 %v2764_v52, %v2736_v54  ;;  %v1332_v48 = vmul.f32 %v2777_v49, %v2736_v54  ;;  %v1488_v11 = vmul.f32 %v2798_v53, %v2736_v54 }
 0x603   :  { %v1261_v27 = vadd.f32 %v2772_v20, %v1254_v44  ;;  %v1495_v6 = vadd.f32 %v2800_v12, %v1488_v11 }
 0x605   :  { %1244 = vrot.lane.b32.xlu0 %v1234_v39, %s2041_s11  ;;  %s2762_s11 = sld [smem:[#allocation12 + $0x204]]  ;;  %v1304_v39 = vadd.f32 %v2774_v45, %v1297_v5  ;;  %v1382_v5 = vadd.f32 %v2788_v3, %v1375_v33  ;;  %v1426_v33 = vmax.f32 %v1421_v63, 0.0  ;;  %v2900_v63 = vmul.f32 %v3286_v30, %v1308_v7 }
 0x606   :  { %v1543_v30 = vmax.f32 %v1538_v24, 0.0  ;;  %v1266_v13 = vmax.f32 %v1261_v27, 0.0 }
 0x607   :  { %v1309_v50 = vmax.f32 %v1304_v39, 0.0  ;;  %v1387_v34 = vmax.f32 %v1382_v5, 0.0  ;;  %v2886_v39 = vmul.f32 %v3283_v4, %v1269_v26  ;;  %v1504_v5 = vmax.f32 %v1499_v57, 0.0 }
 0x608   :  { %v3290_v4 = vstv %s2754_s2  ;;  %v3293_v57 = vstv %s2758_s7  ;;  %v3299_v24 = vstv %s2768_s24  ;;  %v2979_v31 = vmul.f32 %v1560_v35, %v1543_v30  ;;  %s2983_s2 = sld [smem:[#allocation12 + $0x102]] }
 0x609   :  { %v2904_v26 = vmul.f32 %v3287_v9, %v1309_v50  ;;  %v2918_v7 = vmul.f32 %v3290_v4, %v1348_v38  ;;  %v3292_v50 = vstv %s2756_s20  ;;  %v2930_v9 = vmul.f32 %v3293_v57, %v1387_v34  ;;  %s2986_s20 = sld [smem:[#allocation12 + $0x182]] }
 0x60a   :  { %v2926_v55 = vmul.f32 %v3292_v50, %v1386_v42  ;;  %v1293_v42 = vmul.f32 %v2766_v28, %v2736_v54  ;;  %v2948_v34 = vmul.f32 %v3299_v24, %v1464_v46  ;;  %v3301_v4 = vstv %s2770_s27  ;;  %s2969_s27 = sld [smem:[#allocation12 + $0x2]]  ;;  %3308 = vst [vmem:[#allocation64_spill] sm:$0xff] %v2979_v31 }
 0x60b   :  { %3288 = vst [vmem:[#allocation54_spill] sm:$0xff] %v2904_v26  ;;  %3291 = vst [vmem:[#allocation55_spill] sm:$0xff] %v2918_v7  ;;  %v3297_v15 = vstv %s2762_s11  ;;  %v2952_v0 = vmul.f32 %v3301_v4, %v1465_v56  ;;  %v1410_v50 = vmul.f32 %v2790_v43, %v2736_v54  ;;  %v3303_v46 = vstv %s2782_s9  ;;  %s2991_s7 = sld [smem:[#allocation12 + $0x202]] }
 0x60c   :  { %3294 = vst [vmem:[#allocation56_spill] sm:$0xff] %v2930_v9  ;;  %v2938_v38 = vmul.f32 %v3297_v15, %v1426_v33  ;;  %3300 = vst [vmem:[#allocation59_spill] sm:$0xff] %v2948_v34  ;;  %v1371_v33 = vmul.f32 %v2780_v37, %v2736_v54  ;;  %v2966_v57 = vmul.f32 %v3303_v46, %v1503_v47  ;;  %v1272_v56 = vstv %s2868_s4  ;;  %s3007_s11 = sld [smem:[#allocation12 + $0x302]] }
 0x60d   :  { %3302 = vst [vmem:[#allocation60_spill] sm:$0xff] %v2952_v0  ;;  %v3305_v15 = vstv %s2784_s25  ;;  %v2977_v4 = vmul.f32 %v1556_v21, %v1542_v41  ;;  %v1389_v47 = vstv %s2878_s10  ;;  %v1428_v46 = vstv %s2880_s19  ;;  %s3010_s24 = sld [smem:[#allocation12 + $0x382]] }
 0x60e   :  { %3298 = vst [vmem:[#allocation58_spill] sm:$0xff] %v2938_v38  ;;  %3304 = vst [vmem:[#allocation61_spill] sm:$0xff] %v2966_v57  ;;  %v2975_v24 = vmul.f32 %v3305_v15, %v1504_v5  ;;  %v1300_v5 = vadd.f32 %v2774_v45, %v1293_v42  ;;  %v1449_v41 = vmul.f32 %v2794_v36, %v2736_v54  ;;  %v1470_v42 = vstv %s2940_s6 }
 0x60f   :  { %3307 = vst [vmem:[#allocation63_spill] sm:$0xff] %v2977_v4  ;;  %v1339_v30 = vadd.f32 %v2786_v40, %v1332_v48  ;;  %v1378_v44 = vadd.f32 %v2788_v3, %v1371_v33  ;;  %v1417_v15 = vadd.f32 %v2792_v2, %v1410_v50  ;;  %v1527_v21 = vmul.f32 %v2802_v29, %v2736_v54 }
 0x610   :  { %3306 = vst [vmem:[#allocation62_spill] sm:$0xff] %v2975_v24  ;;  %v1353_v48 = vstv %s2910_s21  ;;  %v1392_v33 = vstv %s2920_s22  ;;  %v1431_v50 = vstv %s2922_s23  ;;  %v1305_v25 = vmax.f32 %v1300_v5, 0.0 }
 0x611   :  { %v1344_v35 = vmax.f32 %v1339_v30, 0.0  ;;  %v1383_v1 = vmax.f32 %v1378_v44, 0.0  ;;  %v1422_v8 = vmax.f32 %v1417_v15, 0.0  ;;  %v1456_v60 = vadd.f32 %v2796_v51, %v1449_v41 }
 0x612   :  { %v1534_v22 = vadd.f32 %v2804_v16, %v1527_v21  ;;  %v1273_v59 = vmul.f32 %v1272_v56, %v1266_v13  ;;  %v1312_v5 = vmul.f32 %v1311_v32, %v1305_v25  ;;  %v1500_v38 = vmax.f32 %v1495_v6, 0.0 }
 0x613   :  { %v1351_v44 = vmul.f32 %v1350_v17, %v1344_v35  ;;  %v1390_v15 = vmul.f32 %v1389_v47, %v1383_v1  ;;  %v1429_v24 = vmul.f32 %v1428_v46, %v1422_v8  ;;  %v1461_v41 = vmax.f32 %v1456_v60, 0.0 }
 0x614   :  { %v1539_v9 = vmax.f32 %v1534_v22, 0.0 }
 0x673   :  { %v1239_v0 = vpop.permute.xlu0 %1238 }
 0x674   :  { %v1255_v18 = vmul.f32 %v2764_v52, %v1239_v0  ;;  %v1294_v14 = vmul.f32 %v2766_v28, %v1239_v0  ;;  %v1333_v27 = vmul.f32 %v2777_v49, %v1239_v0  ;;  %v1372_v13 = vmul.f32 %v2780_v37, %v1239_v0 }
 0x675   :  { %v1411_v25 = vmul.f32 %v2790_v43, %v1239_v0  ;;  %v1450_v17 = vmul.f32 %v2794_v36, %v1239_v0  ;;  %v1489_v60 = vmul.f32 %v2798_v53, %v1239_v0  ;;  %v1528_v32 = vmul.f32 %v2802_v29, %v1239_v0 }
 0x676   :  { %v1262_v6 = vadd.f32 %v2772_v20, %v1255_v18  ;;  %v1301_v22 = vadd.f32 %v2774_v45, %v1294_v14  ;;  %v1340_v8 = vadd.f32 %v2786_v40, %v1333_v27  ;;  %v1379_v1 = vadd.f32 %v2788_v3, %v1372_v13 }
 0x677   :  { %v1418_v56 = vadd.f32 %v2792_v2, %v1411_v25  ;;  %v1457_v47 = vadd.f32 %v2796_v51, %v1450_v17  ;;  %v1496_v46 = vadd.f32 %v2800_v12, %v1489_v60  ;;  %v1535_v35 = vadd.f32 %v2804_v16, %v1528_v32 }
 0x678   :  { %v1267_v21 = vmax.f32 %v1262_v6, 0.0  ;;  %v1306_v11 = vmax.f32 %v1301_v22, 0.0  ;;  %v1345_v0 = vmax.f32 %v1340_v8, 0.0  ;;  %v1384_v18 = vmax.f32 %v1379_v1, 0.0  ;;  %v1245_v6 = vpop.permute.xlu0 %1244 }
 0x679   :  { %v1423_v30 = vmax.f32 %v1418_v56, 0.0  ;;  %v1462_v14 = vmax.f32 %v1457_v47, 0.0  ;;  %v1501_v27 = vmax.f32 %v1496_v46, 0.0  ;;  %v1540_v31 = vmax.f32 %v1535_v35, 0.0  ;;  %v1243_v47 = vpop.permute.xlu1 %1242 }
 0x67a   :  { %v3309_v13 = vstv %s2896_s15  ;;  %v1315_v25 = vmul.f32 %v1314_v61, %v1306_v11  ;;  %v1354_v7 = vmul.f32 %v1353_v48, %v1345_v0  ;;  %v1393_v17 = vmul.f32 %v1392_v33, %v1384_v18 }
 0x67b   :  { %v1276_v54 = vmul.f32 %v3309_v13, %v1267_v21  ;;  %v1432_v26 = vmul.f32 %v1431_v50, %v1423_v30  ;;  %v1471_v60 = vmul.f32 %v1470_v42, %v1462_v14  ;;  %v1510_v23 = vmul.f32 %v1509_v10, %v1501_v27 }
 0x67c   :  { %v1549_v32 = vmul.f32 %v1548_v58, %v1540_v31  ;;  %v3310_v8 = vstv %s2892_s29  ;;  %v3311_v1 = vstv %s2894_s30  ;;  %v3312_v56 = vstv %s2906_s17 }
 0x67d   :  { %v1277_v22 = vadd.f32 %v1276_v54, %v1273_v59  ;;  %v1468_v4 = vmul.f32 %v3310_v8, %v1461_v41  ;;  %v1507_v57 = vmul.f32 %v3311_v1, %v1500_v38  ;;  %v1546_v34 = vmul.f32 %v3312_v56, %v1539_v9 }
 0x67e   :  { %v1316_v46 = vadd.f32 %v1315_v25, %v1312_v5  ;;  %v1355_v35 = vadd.f32 %v1354_v7, %v1351_v44  ;;  %v1394_v62 = vadd.f32 %v1393_v17, %v1390_v15  ;;  %v1433_v21 = vadd.f32 %v1432_v26, %v1429_v24 }
 0x67f   :  { %v1472_v61 = vadd.f32 %v1471_v60, %v1468_v4  ;;  %v1511_v48 = vadd.f32 %v1510_v23, %v1507_v57  ;;  %v1550_v33 = vadd.f32 %v1549_v32, %v1546_v34  ;;  %v1247_v42 = vsel %vm1246_vm13, %v1243_v47, %v1245_v6 }
 0x680   :  { %v1256_v10 = vmul.f32 %v2764_v52, %v1247_v42  ;;  %v1295_v59 = vmul.f32 %v2766_v28, %v1247_v42  ;;  %v1334_v58 = vmul.f32 %v2777_v49, %v1247_v42  ;;  %v1373_v31 = vmul.f32 %v2780_v37, %v1247_v42 }
 0x681   :  { %v1412_v9 = vmul.f32 %v2790_v43, %v1247_v42  ;;  %v1451_v38 = vmul.f32 %v2794_v36, %v1247_v42  ;;  %v1490_v7 = vmul.f32 %v2798_v53, %v1247_v42  ;;  %v1529_v26 = vmul.f32 %v2802_v29, %v1247_v42 }
 0x682   :  { %v1263_v23 = vadd.f32 %v2772_v20, %v1256_v10  ;;  %v1302_v34 = vadd.f32 %v2774_v45, %v1295_v59  ;;  %v1341_v52 = vadd.f32 %v2786_v40, %v1334_v58  ;;  %v1380_v28 = vadd.f32 %v2788_v3, %v1373_v31  ;;  %v3321_v10 = vld [vmem:[#allocation57_spill] sm:$0xff]  ;;  %v3322_v58 = vld [vmem:[#allocation59_spill] sm:$0xff] }
 0x683   :  { %v1419_v49 = vadd.f32 %v2792_v2, %v1412_v9  ;;  %v1458_v37 = vadd.f32 %v2796_v51, %v1451_v38  ;;  %v1497_v43 = vadd.f32 %v2800_v12, %v1490_v7  ;;  %v1536_v20 = vadd.f32 %v2804_v16, %v1529_v26  ;;  %v3327_v9 = vld [vmem:[#allocation55_spill] sm:$0xff]  ;;  %v3328_v38 = vld [vmem:[#allocation56_spill] sm:$0xff]  ;;  %v3329_v7 = vld [vmem:[#allocation58_spill] sm:$0xff] }
 0x684   :  { %v1268_v45 = vmax.f32 %v1263_v23, 0.0  ;;  %v1307_v36 = vmax.f32 %v1302_v34, 0.0  ;;  %v1346_v53 = vmax.f32 %v1341_v52, 0.0  ;;  %v1385_v40 = vmax.f32 %v1380_v28, 0.0  ;;  %v3330_v26 = vld [vmem:[#allocation60_spill] sm:$0xff]  ;;  %v3331_v23 = vld [vmem:[#allocation62_spill] sm:$0xff] }
 0x685   :  { %v1424_v29 = vmax.f32 %v1419_v49, 0.0  ;;  %v1463_v57 = vmax.f32 %v1458_v37, 0.0  ;;  %v1502_v3 = vmax.f32 %v1497_v43, 0.0  ;;  %v1541_v24 = vmax.f32 %v1536_v20, 0.0  ;;  %v3332_v52 = vld [vmem:[#allocation64_spill] sm:$0xff] }
 0x686   :  { %v3313_v4 = vstv %s2969_s27  ;;  %v3314_v50 = vstv %s2971_s16  ;;  %v3315_v51 = vstv %s2983_s2  ;;  %v3316_v30 = vstv %s2986_s20 }
 0x687   :  { %v1280_v2 = vmul.f32 %v3313_v4, %v1268_v45  ;;  %v1319_v54 = vmul.f32 %v3314_v50, %v1307_v36  ;;  %v1358_v5 = vmul.f32 %v3315_v51, %v1346_v53  ;;  %v1397_v12 = vmul.f32 %v3316_v30, %v1385_v40 }
 0x688   :  { %v3317_v44 = vstv %s2991_s7  ;;  %v3318_v16 = vstv %s2994_s8  ;;  %v3319_v11 = vstv %s3007_s11  ;;  %v3320_v18 = vstv %s3010_s24 }
 0x689   :  { %v1436_v15 = vmul.f32 %v3317_v44, %v1424_v29  ;;  %v1475_v41 = vmul.f32 %v3318_v16, %v1463_v57  ;;  %v1514_v0 = vmul.f32 %v3319_v11, %v1502_v3  ;;  %v1553_v14 = vmul.f32 %v3320_v18, %v1541_v24 }
 0x68a   :  { %v1281_v27 = vadd.f32 %v1280_v2, %v1277_v22  ;;  %v1320_v13 = vadd.f32 %v1319_v54, %v1316_v46  ;;  %v1359_v25 = vadd.f32 %v1358_v5, %v1355_v35  ;;  %v1398_v17 = vadd.f32 %v1397_v12, %v1394_v62  ;;  %v3323_v22 = vld [vmem:[#allocation61_spill] sm:$0xff]  ;;  %v3324_v35 = vld [vmem:[#allocation63_spill] sm:$0xff] }
 0x68b   :  { %v1437_v60 = vadd.f32 %v1436_v15, %v1433_v21  ;;  %v1476_v32 = vadd.f32 %v1475_v41, %v1472_v61  ;;  %v1515_v6 = vadd.f32 %v1514_v0, %v1511_v48  ;;  %v1554_v8 = vadd.f32 %v1553_v14, %v1550_v33  ;;  %v3325_v21 = vld [vmem:[#allocation53_spill] sm:$0xff]  ;;  %v3326_v48 = vld [vmem:[#allocation54_spill] sm:$0xff]  ;;  %v3334_v54 = vld [vmem:[#allocation19_spill] sm:$0xff] }
 0x68c   :  { %v1285_v1 = vadd.f32 %v2886_v39, %v1281_v27  ;;  %v1324_v56 = vadd.f32 %v2900_v63, %v1320_v13  ;;  %v1363_v47 = vadd.f32 %v2914_v19, %v1359_v25  ;;  %v1402_v42 = vadd.f32 %v2926_v55, %v1398_v17  ;;  %v3335_v14 = vld [vmem:[#allocation20_spill] sm:$0xff] }
 0x68d   :  { %v1441_v59 = vadd.f32 %v3321_v10, %v1437_v60  ;;  %v1480_v31 = vadd.f32 %v3322_v58, %v1476_v32  ;;  %v1519_v46 = vadd.f32 %v3323_v22, %v1515_v6  ;;  %v1558_v62 = vadd.f32 %v3324_v35, %v1554_v8  ;;  %v3336_v8 = vld [vmem:[#allocation25_spill] sm:$0xff] }
 0x68e   :  { %v1289_v61 = vadd.f32 %v3325_v21, %v1285_v1  ;;  %v1328_v33 = vadd.f32 %v3326_v48, %v1324_v56  ;;  %v1367_v39 = vadd.f32 %v3327_v9, %v1363_v47  ;;  %v1406_v63 = vadd.f32 %v3328_v38, %v1402_v42  ;;  %v3337_v56 = vld [vmem:[#allocation26_spill] sm:$0xff]  ;;  %v3342_v9 = vld [vmem:[#allocation37_spill] sm:$0xff] }
 0x68f   :  { %v1445_v19 = vadd.f32 %v3329_v7, %v1441_v59  ;;  %v1484_v55 = vadd.f32 %v3330_v26, %v1480_v31  ;;  %v1523_v34 = vadd.f32 %v3331_v23, %v1519_v46  ;;  %v1562_v28 = vadd.f32 %v3332_v52, %v1558_v62  ;;  %v3338_v31 = vld [vmem:[#allocation21_spill] sm:$0xff]  ;;  %v3340_v62 = vld [vmem:[#allocation22_spill] sm:$0xff]  ;;  %v3344_v7 = vld [vmem:[#allocation27_spill] sm:$0xff] }
 0x690   :  { %v3333_v49 = vstv %s3211_s13  ;;  %v1407_v43 = vadd.f32 %v1406_v63, %v1328_v33  ;;  %v2043_v4 = vmov 1966171168   ;;  %v3339_v46 = vld [vmem:[#allocation29_spill] sm:$0xff]  ;;  %v3343_v38 = vld [vmem:[#allocation38_spill] sm:$0xff]  ;;  %v3345_v26 = vld [vmem:[#allocation23_spill] sm:$0xff]  ;;  %s2044_s13 = smov [#allocation13]  }
 0x691   :  { %v1290_v37 = vadd.f32 %v1289_v61, %v3333_v49  ;;  %v1574_v2 = vunpack.c.l.s4 %v2043_v4  ;;  %v3341_v61 = vld [vmem:[#allocation30_spill] sm:$0xff]  ;;  %v3346_v23 = vld [vmem:[#allocation31_spill] sm:$0xff]  ;;  %v3348_v49 = vld [vmem:[#allocation28_spill] sm:$0xff]  ;;  %s1730_s4 = sshll.u32 %s2044_s13, 4  ;;  %s1731_s4 = int_to_ptr.vmem [resolvable:$true] %s1730_s4 }
 0x692   :  { %v1485_v45 = vadd.f32 %v1484_v55, %v1407_v43  ;;  %v3347_v52 = vld [vmem:[#allocation39_spill] sm:$0xff]  ;;  %v3349_v43 = vld [vmem:[#allocation24_spill] sm:$0xff]  ;;  %v3354_v4 = vld [vmem:[#allocation41_spill] sm:$0xff]  ;;  %s1998_s5 = scalar_lea.vmem %s1731_s4, 4096  ;;  %p2003_p4 = scmp.lt.s32.totalorder %s1731_s4, %s1731_s4 }
 0x693   :  { %v1368_v20 = vadd.f32 %v1367_v39, %v1290_v37  ;;  %v1575_v50 = vunpack.c.0.s8 %v1574_v2  ;;  %p1999_p3 = scmp.ne.s32.totalorder %s1731_s4, %s1998_s5  ;;  %p2004_p5 = scmp.lt.s32.totalorder %s1998_s5, %s1998_s5 }
 0x694   :  { %v1563_v53 = vadd.f32 %v1562_v28, %v1485_v45  ;;  %v3350_v45 = vld [vmem:[#allocation32_spill] sm:$0xff] }
 0x695   :  { %v1446_v36 = vadd.f32 %v1445_v19, %v1368_v20  ;;  %v1578_v51 = vsub.s32 %v1575_v50, %v3334_v54  ;;  %v3355_v50 = vld [vmem:[#allocation49_spill] sm:$0xff]  ;;  %p2005_p6 = por %p2004_p5, %p2003_p4 }
 0x697   :  { %v1524_v40 = vadd.f32 %v1523_v34, %v1446_v36  ;;  %p2006_p7 = pnand %p2005_p6, %p1999_p3 }
 0x699   :  { %v1564_v29 = vadd.f32 %v1563_v53, %v1524_v40  ;;  %v3351_v53 = vld [vmem:[#allocation40_spill] sm:$0xff] }
 0x69b   :  { %v1815_v57 = vmul.f32 -1.442695, %v1564_v29  ;;  %v3352_v29 = vld [vmem:[#allocation33_spill] sm:$0xff] }
 0x69d   :  { %1914 = vpow2.f32 %v1815_v57 }
 0x6a7   :  { %v1915_v3 = vpop.eup %1914 }
 0x6a8   :  { %v1568_v24 = vadd.f32 1.0, %v1915_v3  ;;  %v3353_v3 = vld [vmem:[#allocation45_spill] sm:$0xff] }
 0x6aa   :  { %1916 = vrcp.f32 %v1568_v24 }
 0x6b4   :  { %v1917_v5 = vpop.eup %1916 }
 0x6b5   :  { %v1572_v30 = vcombine.high %v1917_v5, %v1917_v5  ;;  %v1579_v12 = vrot.slane %v1917_v5, %v1578_v51 }
 0x6b7   :  { %v1586_v44 = vrot.slane %v1572_v30, %v1578_v51  ;;  %v1587_v15 = vcombine.high %v1579_v12, %v1579_v12  ;;  %v1595_v16 = vrot.slane %v1579_v12, %v1578_v51  ;;  %v3357_v30 = vld [vmem:[#allocation46_spill] sm:$0xff] }
 0x6b9   :  { %v1588_v41 = vcombine.high %v1586_v44, %v1586_v44  ;;  %v1602_v11 = vrot.slane %v1586_v44, %v1578_v51  ;;  %v1609_v0 = vrot.slane %v1587_v15, %v1578_v51  ;;  %v1617_v18 = vcombine.high %v1595_v16, %v1595_v16  ;;  %v3358_v44 = vld [vmem:[#allocation42_spill] sm:$0xff] }
 0x6ba   :  { %v1624_v27 = vrot.slane %v1595_v16, %v3335_v14  ;;  %v3359_v16 = vld [vmem:[#allocation50_spill] sm:$0xff] }
 0x6bb   :  { %v1616_v13 = vrot.slane %v1588_v41, %v1578_v51  ;;  %v1618_v25 = vcombine.high %v1602_v11, %v1602_v11  ;;  %v1619_v17 = vcombine.high %v1609_v0, %v1609_v0  ;;  %v1628_v60 = vrot.slane %v1609_v0, %v3335_v14  ;;  %v3356_v51 = vld [vmem:[#allocation34_spill] sm:$0xff] }
 0x6bc   :  { %v1632_v32 = vrot.slane %v1617_v18, %v3335_v14  ;;  %v1640_v6 = vrot.slane %v1602_v11, %v3335_v14  ;;  %v1661_v1 = vmul.f32 %v1624_v27, %v3336_v8  ;;  %v1665_v47 = vmul.f32 %v1624_v27, %v3337_v56  ;;  %v3360_v11 = vld [vmem:[#allocation35_spill] sm:$0xff]  ;;  %v3365_v8 = vld [vmem:[#allocation48_spill] sm:$0xff] }
 0x6bd   :  { %v1620_v42 = vcombine.high %v1616_v13, %v1616_v13  ;;  %v1636_v10 = vrot.slane %v1619_v17, %v3335_v14  ;;  %v1644_v59 = vrot.slane %v1616_v13, %v3335_v14  ;;  %v1648_v58 = vrot.slane %v1618_v25, %v3335_v14  ;;  %v3361_v18 = vld [vmem:[#allocation47_spill] sm:$0xff]  ;;  %v3366_v56 = vld [vmem:[#allocation44_spill] sm:$0xff] }
 0x6be   :  { %v1662_v22 = vmul.f32 %v1628_v60, %v3338_v31  ;;  %v1663_v35 = vmul.f32 %v1632_v32, %v3339_v46  ;;  %v1666_v21 = vmul.f32 %v1628_v60, %v3340_v62  ;;  %v1667_v48 = vmul.f32 %v1632_v32, %v3341_v61  ;;  %1693 = vst.msk [vmem:[#allocation13] sm:$0xff] %vm145_vm0, %v1661_v1  ;;  %v3363_v25 = vld [vmem:[#allocation51_spill] sm:$0xff] }
 0x6bf   :  { %1697 = vst.msk [vmem:[#allocation13 + $0x20] sm:$0xff] %vm145_vm0, %v1665_v47  ;;  %v1652_v33 = vrot.slane %v1620_v42, %v3335_v14  ;;  %v1664_v39 = vmul.f32 %v1636_v10, %v3342_v9  ;;  %v1668_v63 = vmul.f32 %v1636_v10, %v3343_v38  ;;  %v1669_v19 = vmul.f32 %v1624_v27, %v3344_v7  ;;  %v3367_v42 = vld [vmem:[#allocation52_spill] sm:$0xff] }
 0x6c0   :  { %v1670_v55 = vmul.f32 %v1628_v60, %v3345_v26  ;;  %v1671_v34 = vmul.f32 %v1632_v32, %v3346_v23  ;;  %v1672_v28 = vmul.f32 %v1636_v10, %v3347_v52  ;;  %v1673_v37 = vmul.f32 %v1624_v27, %v3348_v49  ;;  %1694 = vst.msk [vmem:[#allocation13 + $0x8] sm:$0xff] %vm145_vm0, %v1662_v22  ;;  %v3362_v27 = vld [vmem:[#allocation43_spill] sm:$0xff] }
 0x6c1   :  { %1695 = vst.msk [vmem:[#allocation13 + $0x10] sm:$0xff] %vm145_vm0, %v1663_v35  ;;  %1698 = vst.msk [vmem:[#allocation13 + $0x28] sm:$0xff] %vm145_vm0, %v1666_v21  ;;  %v1674_v20 = vmul.f32 %v1628_v60, %v3349_v43  ;;  %v1675_v36 = vmul.f32 %v1632_v32, %v3350_v45  ;;  %v1676_v40 = vmul.f32 %v1636_v10, %v3351_v53  ;;  %v3364_v60 = vld [vmem:[#allocation36_spill] sm:$0xff] }
 0x6c2   :  { %1699 = vst.msk [vmem:[#allocation13 + $0x30] sm:$0xff] %vm145_vm0, %v1667_v48  ;;  %v1677_v57 = vmul.f32 %v1640_v6, %v3352_v29  ;;  %1696 = vst.msk [vmem:[#allocation13 + $0x18] sm:$0xff] %vm145_vm0, %v1664_v39  ;;  %v1678_v24 = vmul.f32 %v1644_v59, %v3353_v3  ;;  %v1679_v2 = vmul.f32 %v1648_v58, %v3354_v4 }
 0x6c3   :  { %1700 = vst.msk [vmem:[#allocation13 + $0x38] sm:$0xff] %vm145_vm0, %v1668_v63  ;;  %1701 = vst.msk [vmem:[#allocation13 + $0x40] sm:$0xff] %vm145_vm0, %v1669_v19  ;;  %v1680_v54 = vmul.f32 %v1652_v33, %v3355_v50  ;;  %v1681_v5 = vmul.f32 %v1640_v6, %v3356_v51  ;;  %v1682_v12 = vmul.f32 %v1644_v59, %v3357_v30 }
 0x6c4   :  { %1702 = vst.msk [vmem:[#allocation13 + $0x48] sm:$0xff] %vm145_vm0, %v1670_v55  ;;  %1703 = vst.msk [vmem:[#allocation13 + $0x50] sm:$0xff] %vm145_vm0, %v1671_v34  ;;  %v1683_v15 = vmul.f32 %v1648_v58, %v3358_v44  ;;  %v1684_v41 = vmul.f32 %v1652_v33, %v3359_v16  ;;  %v1685_v0 = vmul.f32 %v1640_v6, %v3360_v11 }
 0x6c5   :  { %1704 = vst.msk [vmem:[#allocation13 + $0x58] sm:$0xff] %vm145_vm0, %v1672_v28  ;;  %1705 = vst.msk [vmem:[#allocation13 + $0x60] sm:$0xff] %vm145_vm0, %v1673_v37  ;;  %v1686_v14 = vmul.f32 %v1644_v59, %v3361_v18  ;;  %v1687_v13 = vmul.f32 %v1648_v58, %v3362_v27  ;;  %v1688_v17 = vmul.f32 %v1652_v33, %v3363_v25 }
 0x6c6   :  { %1706 = vst.msk [vmem:[#allocation13 + $0x68] sm:$0xff] %vm145_vm0, %v1674_v20  ;;  %1707 = vst.msk [vmem:[#allocation13 + $0x70] sm:$0xff] %vm145_vm0, %v1675_v36  ;;  %v1689_v32 = vmul.f32 %v1640_v6, %v3364_v60  ;;  %v1690_v1 = vmul.f32 %v1644_v59, %v3365_v8  ;;  %v1691_v47 = vmul.f32 %v1648_v58, %v3366_v56 }
 0x6c7   :  { %1708 = vst.msk [vmem:[#allocation13 + $0x78] sm:$0xff] %vm145_vm0, %v1676_v40  ;;  %1709 = vst.msk [vmem:[#allocation13 + $0x80] sm:$0xff] %vm145_vm0, %v1677_v57  ;;  %v1692_v10 = vmul.f32 %v1652_v33, %v3367_v42 }
 0x6c8   :  { %1710 = vst.msk [vmem:[#allocation13 + $0x88] sm:$0xff] %vm145_vm0, %v1678_v24  ;;  %1711 = vst.msk [vmem:[#allocation13 + $0x90] sm:$0xff] %vm145_vm0, %v1679_v2 }
 0x6c9   :  { %1712 = vst.msk [vmem:[#allocation13 + $0x98] sm:$0xff] %vm145_vm0, %v1680_v54  ;;  %1713 = vst.msk [vmem:[#allocation13 + $0xa0] sm:$0xff] %vm145_vm0, %v1681_v5 }
 0x6ca   :  { %1714 = vst.msk [vmem:[#allocation13 + $0xa8] sm:$0xff] %vm145_vm0, %v1682_v12  ;;  %1715 = vst.msk [vmem:[#allocation13 + $0xb0] sm:$0xff] %vm145_vm0, %v1683_v15 }
 0x6cb   :  { %1716 = vst.msk [vmem:[#allocation13 + $0xb8] sm:$0xff] %vm145_vm0, %v1684_v41  ;;  %1717 = vst.msk [vmem:[#allocation13 + $0xc0] sm:$0xff] %vm145_vm0, %v1685_v0 }
 0x6cc   :  { %1718 = vst.msk [vmem:[#allocation13 + $0xc8] sm:$0xff] %vm145_vm0, %v1686_v14  ;;  %1719 = vst.msk [vmem:[#allocation13 + $0xd0] sm:$0xff] %vm145_vm0, %v1687_v13 }
 0x6cd   :  { %1720 = vst.msk [vmem:[#allocation13 + $0xd8] sm:$0xff] %vm145_vm0, %v1688_v17  ;;  %1721 = vst.msk [vmem:[#allocation13 + $0xe0] sm:$0xff] %vm145_vm0, %v1689_v32 }
 0x6ce   :  { %1722 = vst.msk [vmem:[#allocation13 + $0xe8] sm:$0xff] %vm145_vm0, %v1690_v1  ;;  %1723 = vst.msk [vmem:[#allocation13 + $0xf0] sm:$0xff] %vm145_vm0, %v1691_v47 }
 0x6cf   :  { %1724 = vst.msk [vmem:[#allocation13 + $0xf8] sm:$0xff] %vm145_vm0, %v1692_v10 }
 0x6d0   :  { %2009 = shalt.err (!%p2006_p7)
}
 0x6d1   :  { %s2010_s19 = scalar_lea.hbm %s3212_s14, 4096 }
 0x6d2   :  { %p2011_p8 = scmp.ne.s32.totalorder %s3212_s14, %s2010_s19  ;;  %p2014_p9 = scmp.lt.u32.totalorder %s2010_s19, %s3212_s14 }
 0x6d4   :  { %p2016_p10 = pnand %p2014_p9, %p2011_p8 }
 0x6d6   :  { %2019 = shalt.err (!%p2016_p10)
}
 0x6d7   :  { %s3368_s18 = smov 128  }
 0x6d8   :  { %1736 = dma.vmem_to_hbm [thread:$0]  %s1731_s4, 4096, %s3212_s14, [#allocation5], %s3368_s18, %s3368_s18, %s2033_s28  }
 0x6d9   :  { %2028 = dma.done.wait [#allocation5], 4096  }
 0x6da   :  { %2029 = vsyncadd [#allocation5], 4294963200 }
 0x6db   :  { %1740 = vsyncpa [#allocation4], 1 }
 0x6dc   :  { %1741 = vsyncpa [#allocation8], 1 }
 0x6dd   :  { %1742 = vsyncpa [#allocation5], 1 }
 0x6de   :  { %1743 = vsyncpa [#allocation6], 1 }
 0x6df   :  { %1744 = vsyncpa [#allocation11], 1 }

</bundles_post_ra>
